<compile_context>
chip_gen: v5e
topology: v5e:2x2
jax: 0.10.0
libtpu: 0.0.40
codegen_flags: <defaults>
</compile_context>

<pallas_src>
import jax
import jax.numpy as jnp
from jax.experimental import pallas as pl
from jax.experimental.pallas import tpu as pltpu

# ---- model hyper-parameters (small, consistent with the module ctor) ---------
OBS_LEN = 8            # obs_len
PRED_LEN = 10          # pred_len (unused: predict_trajectory=False)
INPUT_SIZE = 4         # input_size        (F)
EMBED = 16             # inputembedding_size (E)
HIDDEN = 32            # hidden_size       (H)
NUM_LAYERS = 1         # num_layers
HEADS = 4              # head_num
HEAD_DIM = HIDDEN // HEADS
N_SURR = 4             # number of surrounding agents
BATCH = 2
ROW_PAD = 8            # target rows padded to one f32 sublane tile
BN = BATCH * N_SURR    # surrounding rows
RTOT = ROW_PAD + BN    # 16 rows total per time step
TR = OBS_LEN * RTOT    # 128 flattened (time, row) rows
OUT_LANES = 128        # lane-dense output tile width


# ---- parameter-slab layout (all offsets are static, multiples of 8 rows) -----
def _round8(n):
    return ((n + 7) // 8) * 8


_SLAB_ENTRIES = [
    # name        rows            cols
    ("gate",      TR,             2 * INPUT_SIZE),   # sigmoid(fw) expanded per row/time
    ("b_emb",     TR,             2 * EMBED),        # block-diag embedding bias (zero other half)
    ("b_lstm",    TR,             4 * HIDDEN),       # fused LSTM bias (b_ih + b_hh), per row type
    ("mask2",     RTOT,           2 * HIDDEN),       # routes each row to its W_hh block
    ("rep",       BN,             ROW_PAD),          # replicate target query over its N agents
    ("pool_b",    ROW_PAD,        BN),               # sum over each batch's agents
    ("pool_h",    HIDDEN,         HEADS),            # reduce lanes within a head
    ("spread_h",  HEADS,          HIDDEN),           # broadcast head weight back to lanes
    ("b_int",     ROW_PAD,        OUT_LANES),        # intention bias in cols 0:3
    ("w_emb",     2 * INPUT_SIZE, 2 * EMBED),        # block-diag  [We_t 0; 0 We_s]
    ("w_ih",      2 * EMBED,      4 * HIDDEN),       # block-stack [Wih_t; Wih_s]
    ("w_hh",      2 * HIDDEN,     4 * HIDDEN),       # block-stack [Whh_t; Whh_s]
    ("w_qkv",     HIDDEN,         3 * HIDDEN),       # [Wq | Wk | Wv]
    ("w_o",       HIDDEN,         HIDDEN),
    ("w_int",     HIDDEN,         OUT_LANES),        # intention weight in cols 0:3
]
SLAB_LAYOUT = {}
_row = 0
for _name, _nr, _nc in _SLAB_ENTRIES:
    SLAB_LAYOUT[_name] = (_row, _nr, _nc)
    _row += _round8(_nr)
SLAB_ROWS = _row        # 664


# ==============================================================================
# Single fused kernel:
#   FeatureWeighting_{target,surrounding} + LSTM_{target,surrounding}
#   + A2A multi-head attention + intention_prediction Linear(H -> 3)
# ==============================================================================
def fused_forward_kernel(x_ref, slab_ref, out_ref):
    H = HIDDEN
    G = 4 * H

    def w(name):                      # static (zero-cost) slab slice, f32
        r0, nr, nc = SLAB_LAYOUT[name]
        return slab_ref[r0:r0 + nr, 0:nc]

    def wb(name):                     # bf16 view of an MXU weight (cast once)
        return w(name).astype(jnp.bfloat16)

    # ---- FeatureWeighting + hoisted LSTM input path (both encoders fused) ----
    xw = x_ref[...] * w("gate")                                          # (TR, 2F)
    emb = jnp.maximum(
        jnp.dot(xw.astype(jnp.bfloat16), wb("w_emb"),
                preferred_element_type=jnp.float32) + w("b_emb"), 0.0)   # (TR, 2E)
    xg = jnp.dot(emb.astype(jnp.bfloat16), wb("w_ih"),
                 preferred_element_type=jnp.float32) + w("b_lstm")       # (TR, 4H)

    # ---- dual-chain LSTM recurrence: ONE (16,2H)@(2H,4H) bf16 dot per step ----
    w_hh = wb("w_hh")                 # cast hoisted out of the serial loop
    mask2 = w("mask2")                # (RTOT, 2H) 0/1: target rows -> lanes 0:H, surr -> H:2H
    h = jnp.zeros((RTOT, H), jnp.float32)
    c = jnp.zeros((RTOT, H), jnp.float32)
    for t in range(OBS_LEN):          # static unroll; serial dependence anyway
        h2 = jnp.concatenate([h, h], axis=1) * mask2                     # route rows to W_hh block
        hw = jnp.dot(h2.astype(jnp.bfloat16), w_hh,
                     preferred_element_type=jnp.float32)                 # (RTOT, 4H)
        gates = xg[t * RTOT:(t + 1) * RTOT, :] + hw
        sig = jax.nn.sigmoid(gates)   # one EUP pass over the full 4H block
        i_g = sig[:, 0:H]
        f_g = sig[:, H:2 * H]
        o_g = sig[:, 3 * H:4 * H]
        g_g = jnp.tanh(gates[:, 2 * H:3 * H])
        c = f_g * c + i_g * g_g
        h = o_g * jnp.tanh(c)

    tgt_h = h[0:ROW_PAD, :]                                              # (8, H)

    # ---- A2A multi-head attention: q/k/v from ONE packed dot over all rows ---
    qkv = jnp.dot(h.astype(jnp.bfloat16), wb("w_qkv"),
                  preferred_element_type=jnp.float32)                    # (RTOT, 3H)
    q = qkv[0:ROW_PAD, 0:H]                                              # target rows -> queries
    k = qkv[ROW_PAD:RTOT, H:2 * H]                                       # surr rows   -> keys
    v = qkv[ROW_PAD:RTOT, 2 * H:3 * H]                                   # surr rows   -> values

    rep, pool_b = w("rep"), w("pool_b")
    pool_h, spread_h = w("pool_h"), w("spread_h")
    scale = 1.0 / (HEAD_DIM ** 0.5)

    q_rep = jnp.dot(rep, q, preferred_element_type=jnp.float32)          # (BN, H)
    scores = jnp.dot(q_rep * k, pool_h,
                     preferred_element_type=jnp.float32) * scale         # (BN, heads)

    # softmax over each batch's n_surr agents (per head), per-group max for stability
    row_bn = jax.lax.broadcasted_iota(jnp.int32, (BN, HEADS), 0)
    neg = jnp.float32(-1e30)
    m_bc = jnp.zeros_like(scores)
    for b in range(BATCH):            # static unroll over batch groups
        in_grp = (row_bn >= b * N_SURR) & (row_bn < (b + 1) * N_SURR)
        m_b = jnp.max(jnp.where(in_grp, scores, neg), axis=0, keepdims=True)
        m_bc = jnp.where(in_grp, m_b, m_bc)
    e = jnp.exp(scores - m_bc)                                           # (BN, heads)
    denom = jnp.dot(pool_b, e, preferred_element_type=jnp.float32)       # (ROW_PAD, heads)
    denom = jnp.where(denom > 0.0, denom, 1.0)                           # guard padded rows
    attn = e * jnp.dot(rep, pl.reciprocal(denom, approx=True),
                       preferred_element_type=jnp.float32)               # (BN, heads)

    ctx = jnp.dot(
        pool_b,
        jnp.dot(attn, spread_h, preferred_element_type=jnp.float32) * v,
        preferred_element_type=jnp.float32)                              # (ROW_PAD, H)
    attn_out = tgt_h + jnp.dot(ctx.astype(jnp.bfloat16), wb("w_o"),
                               preferred_element_type=jnp.float32)       # residual

    # lane-dense (8,128) store; real logits live in cols 0:3 (rest multiplies zero weights)
    out_ref[...] = (jnp.dot(attn_out.astype(jnp.bfloat16), wb("w_int"),
                            preferred_element_type=jnp.float32) + w("b_int"))


# ==============================================================================
# Parameter init (deterministic), host-side slab packing, and the forward pass.
# ==============================================================================
def _normal(key, shape, scale=0.1):
    return scale * jax.random.normal(key, shape, jnp.float32)


def init_params(key):
    ks = jax.random.split(key, 8)

    def encoder_params(k):
        kk = jax.random.split(k, 6)
        return {
            "fw_gate": _normal(kk[0], (OBS_LEN, INPUT_SIZE)),
            "w_emb":   _normal(kk[1], (INPUT_SIZE, EMBED)),
            "b_emb":   _normal(kk[2], (1, EMBED)),
            "w_ih":    _normal(kk[3], (EMBED, 4 * HIDDEN)),
            "w_hh":    _normal(kk[4], (HIDDEN, 4 * HIDDEN)),
            "b_lstm":  _normal(kk[5], (1, 4 * HIDDEN)),   # fused b_ih + b_hh
        }

    return {
        "target_enc": encoder_params(ks[0]),
        "surr_enc":   encoder_params(ks[1]),
        "a2a": {
            "wq": _normal(ks[2], (HIDDEN, HIDDEN)),
            "wk": _normal(ks[3], (HIDDEN, HIDDEN)),
            "wv": _normal(ks[4], (HIDDEN, HIDDEN)),
            "wo": _normal(ks[5], (HIDDEN, HIDDEN)),
            "w_int": _normal(ks[6], (HIDDEN, 3)),
            "b_int": _normal(ks[7], (1, 3)),
        },
    }


def pack_params(params):
    """Pack all weights (with the block-diag / block-stack fusion transforms) into one f32 slab."""
    pt, ps, pa = params["target_enc"], params["surr_enc"], params["a2a"]
    F, E, H = INPUT_SIZE, EMBED, HIDDEN
    tgt_row = jnp.arange(RTOT) < ROW_PAD                       # (16,) True for target rows

    # FeatureWeighting gate: sigmoid precomputed host-side (parameter-only transform),
    # expanded to the (time, row, 2F) layout of x_all.
    sig_t = jnp.tile(jax.nn.sigmoid(pt["fw_gate"]), (1, 2))    # (T, 2F)
    sig_s = jnp.tile(jax.nn.sigmoid(ps["fw_gate"]), (1, 2))
    gate = jnp.where(tgt_row[None, :, None], sig_t[:, None, :], sig_s[:, None, :])
    gate = gate.reshape(TR, 2 * F)

    # embedding bias: zero in the "other encoder" half so the block-diag path stays exact
    b_emb_t = jnp.concatenate([pt["b_emb"], jnp.zeros((1, E), jnp.float32)], axis=1)
    b_emb_s = jnp.concatenate([jnp.zeros((1, E), jnp.float32), ps["b_emb"]], axis=1)
    b_emb = jnp.tile(jnp.where(tgt_row[:, None], b_emb_t, b_emb_s), (OBS_LEN, 1))   # (TR, 2E)

    # fused LSTM bias per row type, tiled over time (added once into the hoisted xg)
    b_lstm = jnp.tile(jnp.where(tgt_row[:, None], pt["b_lstm"], ps["b_lstm"]),
                      (OBS_LEN, 1))                                                  # (TR, 4H)

    # routing mask for the block-stacked recurrent weight
    left = jnp.concatenate([jnp.ones((1, H)), jnp.zeros((1, H))], axis=1)
    right = jnp.concatenate([jnp.zeros((1, H)), jnp.ones((1, H))], axis=1)
    mask2 = jnp.where(tgt_row[:, None], left, right).astype(jnp.float32)             # (RTOT, 2H)

    # attention selection / pooling 0-1 matrices
    rep = (jnp.arange(BN)[:, None] // N_SURR ==
           jnp.arange(ROW_PAD)[None, :]).astype(jnp.float32)                         # (BN, 8)
    pool_b = rep.T                                                                    # (8, BN)
    pool_h = (jnp.arange(H)[:, None] // HEAD_DIM ==
              jnp.arange(HEADS)[None, :]).astype(jnp.float32)                        # (H, heads)
    spread_h = pool_h.T                                                               # (heads, H)
    b_int = jnp.zeros((ROW_PAD, OUT_LANES), jnp.float32).at[:, 0:3].set(
        jnp.broadcast_to(pa["b_int"], (ROW_PAD, 3)))

    # block-diag / block-stacked MXU weights
    w_emb = (jnp.zeros((2 * F, 2 * E), jnp.float32)
             .at[0:F, 0:E].set(pt["w_emb"])
             .at[F:2 * F, E:2 * E].set(ps["w_emb"]))
    w_ih = jnp.concatenate([pt["w_ih"], ps["w_ih"]], axis=0)          # (2E, 4H)
    w_hh = jnp.concatenate([pt["w_hh"], ps["w_hh"]], axis=0)          # (2H, 4H)
    w_qkv = jnp.concatenate([pa["wq"], pa["wk"], pa["wv"]], axis=1)   # (H, 3H)
    w_o = pa["wo"]
    w_int = jnp.zeros((H, OUT_LANES), jnp.float32).at[:, 0:3].set(pa["w_int"])

    tensors = {"gate": gate, "b_emb": b_emb, "b_lstm": b_lstm, "mask2": mask2,
               "rep": rep, "pool_b": pool_b, "pool_h": pool_h, "spread_h": spread_h,
               "b_int": b_int, "w_emb": w_emb, "w_ih": w_ih, "w_hh": w_hh,
               "w_qkv": w_qkv, "w_o": w_o, "w_int": w_int}

    slab = jnp.zeros((SLAB_ROWS, OUT_LANES), jnp.float32)
    for name, arr in tensors.items():
        r0, nr, nc = SLAB_LAYOUT[name]
        slab = slab.at[r0:r0 + nr, 0:nc].set(arr.astype(jnp.float32))
    return slab


@jax.jit
def road_prediction_forward(target_feature, surrounding_feature,
                            origin_feature, centerline_info, slab):
    # origin_feature / centerline_info are unused in the predict_trajectory=False path,
    # matching the PyTorch forward.
    del origin_feature, centerline_info
    B, T, F = target_feature.shape
    N = surrounding_feature.shape[1]
    assert (B, T, F, N) == (BATCH, OBS_LEN, INPUT_SIZE, N_SURR)

    # host-side layout plumbing: time-major, row-stacked, feature-block layout
    xt = jnp.transpose(target_feature, (1, 0, 2)).astype(jnp.float32)      # (T, B, F)
    xt = jnp.pad(xt, ((0, 0), (0, ROW_PAD - B), (0, 0)))                   # (T, 8, F)
    xs = jnp.transpose(surrounding_feature.reshape(B * N, T, F),
                       (1, 0, 2)).astype(jnp.float32)                      # (T, B*N, F)
    x_t_part = jnp.pad(xt, ((0, 0), (0, 0), (0, F)))                       # features in cols 0:F
    x_s_part = jnp.pad(xs, ((0, 0), (0, 0), (F, 0)))                       # features in cols F:2F
    x_all = jnp.concatenate([x_t_part, x_s_part], axis=1).reshape(TR, 2 * F)

    out = pl.pallas_call(
        fused_forward_kernel,
        out_shape=jax.ShapeDtypeStruct((ROW_PAD, OUT_LANES), jnp.float32),  # lane-dense tile
        grid=(1,),
        in_specs=[pl.BlockSpec((TR, 2 * F), lambda i: (0, 0)),
                  pl.BlockSpec((SLAB_ROWS, OUT_LANES), lambda i: (0, 0))],
        out_specs=pl.BlockSpec((ROW_PAD, OUT_LANES), lambda i: (0, 0)),
        compiler_params=pltpu.CompilerParams(dimension_semantics=("arbitrary",)),
    )(x_all, slab)
    return out[0:B, 0:3]


if __name__ == "__main__":
    key = jax.random.PRNGKey(0)
    k1, k2, k3, k4 = jax.random.split(key, 4)
    target_feature = jax.random.normal(k1, (BATCH, OBS_LEN, INPUT_SIZE), jnp.float32)
    surrounding_feature = jax.random.normal(
        k2, (BATCH, N_SURR, OBS_LEN, INPUT_SIZE), jnp.float32)
    origin_feature = jax.random.normal(k3, (BATCH, 4), jnp.float32)            # unused
    centerline_info = jax.random.normal(k4, (BATCH, 3, OBS_LEN, 2), jnp.float32)  # unused

    params = init_params(jax.random.PRNGKey(42))
    slab = pack_params(params)

    intention_score = road_prediction_forward(
        target_feature, surrounding_feature, origin_feature, centerline_info, slab)
    jax.block_until_ready(intention_score)

    assert intention_score.shape == (BATCH, 3)
    assert bool(jnp.all(jnp.isfinite(intention_score)))
    print("KERNEL_OK")
</pallas_src>

<mosaic_0001>
module attributes {stable_mosaic.version = 11 : i64} {
  func.func @fused_forward_kernel(%arg0: i32, %arg1: memref<128x8xf32, #tpu.memory_space<vmem>>, %arg2: memref<664x128xf32, #tpu.memory_space<vmem>>, %arg3: memref<8x128xf32, #tpu.memory_space<vmem>>) attributes {dimension_semantics = [#tpu.dimension_semantics<arbitrary>], iteration_bounds = array<i64: 1>, scalar_prefetch = 0 : i64, scratch_operands = 0 : i64, tpu.core_type = #tpu.core_type<tc>, window_params = [{pipeline_mode = #tpu.pipeline_mode<synchronous>, transform_indices = @transform_0, window_bounds = array<i64: 128, 8>}, {pipeline_mode = #tpu.pipeline_mode<synchronous>, transform_indices = @transform_1, window_bounds = array<i64: 664, 128>}, {pipeline_mode = #tpu.pipeline_mode<synchronous>, transform_indices = @transform_2, window_bounds = array<i64: 8, 128>}]} {
    %c0 = arith.constant 0 : index
    %c0_0 = arith.constant 0 : index
    %0 = vector.load %arg1[%c0, %c0_0] : memref<128x8xf32, #tpu.memory_space<vmem>>, vector<128x8xf32>
    %c0_1 = arith.constant 0 : index
    %c0_2 = arith.constant 0 : index
    %1 = vector.load %arg2[%c0_1, %c0_2] : memref<664x128xf32, #tpu.memory_space<vmem>>, vector<128x8xf32>
    %2 = arith.mulf %0, %1 : vector<128x8xf32>
    %3 = arith.truncf %2 : vector<128x8xf32> to vector<128x8xbf16>
    %c464 = arith.constant 464 : index
    %c0_3 = arith.constant 0 : index
    %4 = vector.load %arg2[%c464, %c0_3] : memref<664x128xf32, #tpu.memory_space<vmem>>, vector<8x32xf32>
    %5 = arith.truncf %4 : vector<8x32xf32> to vector<8x32xbf16>
    %cst = arith.constant dense<0.000000e+00> : vector<128x32xf32>
    %6 = tpu.matmul %3, %5, %cst {dimension_numbers = #tpu.dot_dimension_numbers<[1], [0], [0], [1], [0, 0, 1, 1], [], []>} : vector<128x8xbf16>, vector<8x32xbf16>, vector<128x32xf32> -> vector<128x32xf32>
    %c128 = arith.constant 128 : index
    %c0_4 = arith.constant 0 : index
    %7 = vector.load %arg2[%c128, %c0_4] : memref<664x128xf32, #tpu.memory_space<vmem>>, vector<128x32xf32>
    %8 = arith.addf %6, %7 : vector<128x32xf32>
    %cst_5 = arith.constant 0.000000e+00 : f32
    %9 = vector.broadcast %cst_5 : f32 to vector<128x32xf32>
    %10 = arith.maximumf %8, %9 : vector<128x32xf32>
    %11 = arith.truncf %10 : vector<128x32xf32> to vector<128x32xbf16>
    %c472 = arith.constant 472 : index
    %c0_6 = arith.constant 0 : index
    %12 = vector.load %arg2[%c472, %c0_6] : memref<664x128xf32, #tpu.memory_space<vmem>>, vector<32x128xf32>
    %13 = arith.truncf %12 : vector<32x128xf32> to vector<32x128xbf16>
    %cst_7 = arith.constant dense<0.000000e+00> : vector<128x128xf32>
    %14 = tpu.matmul %11, %13, %cst_7 {dimension_numbers = #tpu.dot_dimension_numbers<[1], [0], [0], [1], [0, 0, 1, 1], [], []>} : vector<128x32xbf16>, vector<32x128xbf16>, vector<128x128xf32> -> vector<128x128xf32>
    %c256 = arith.constant 256 : index
    %c0_8 = arith.constant 0 : index
    %15 = vector.load %arg2[%c256, %c0_8] : memref<664x128xf32, #tpu.memory_space<vmem>>, vector<128x128xf32>
    %16 = arith.addf %14, %15 : vector<128x128xf32>
    %c504 = arith.constant 504 : index
    %c0_9 = arith.constant 0 : index
    %17 = vector.load %arg2[%c504, %c0_9] : memref<664x128xf32, #tpu.memory_space<vmem>>, vector<64x128xf32>
    %18 = arith.truncf %17 : vector<64x128xf32> to vector<64x128xbf16>
    %c384 = arith.constant 384 : index
    %c0_10 = arith.constant 0 : index
    %19 = vector.load %arg2[%c384, %c0_10] : memref<664x128xf32, #tpu.memory_space<vmem>>, vector<16x64xf32>
    %cst_11 = arith.constant 0.000000e+00 : f32
    %20 = vector.broadcast %cst_11 : f32 to vector<16x32xf32>
    %cst_12 = arith.constant 0.000000e+00 : f32
    %21 = vector.broadcast %cst_12 : f32 to vector<16x32xf32>
    %22 = tpu.concatenate %20, %20 in 1 : vector<16x32xf32>, vector<16x32xf32> -> vector<16x64xf32>
    %23 = arith.mulf %22, %19 : vector<16x64xf32>
    %24 = arith.truncf %23 : vector<16x64xf32> to vector<16x64xbf16>
    %cst_13 = arith.constant dense<0.000000e+00> : vector<16x128xf32>
    %25 = tpu.matmul %24, %18, %cst_13 {dimension_numbers = #tpu.dot_dimension_numbers<[1], [0], [0], [1], [0, 0, 1, 1], [], []>} : vector<16x64xbf16>, vector<64x128xbf16>, vector<16x128xf32> -> vector<16x128xf32>
    %26 = vector.extract_strided_slice %16 {offsets = [0, 0], sizes = [16, 128], strides = [1, 1]} : vector<128x128xf32> to vector<16x128xf32>
    %27 = arith.addf %26, %25 : vector<16x128xf32>
    %28 = arith.negf %27 : vector<16x128xf32>
    %29 = math.exp %28 : vector<16x128xf32>
    %cst_14 = arith.constant 1.000000e+00 : f32
    %30 = vector.broadcast %cst_14 : f32 to vector<16x128xf32>
    %31 = arith.addf %30, %29 : vector<16x128xf32>
    %32 = arith.divf %30, %31 : vector<16x128xf32>
    %33 = vector.extract_strided_slice %32 {offsets = [0, 0], sizes = [16, 32], strides = [1, 1]} : vector<16x128xf32> to vector<16x32xf32>
    %34 = vector.extract_strided_slice %32 {offsets = [0, 32], sizes = [16, 32], strides = [1, 1]} : vector<16x128xf32> to vector<16x32xf32>
    %35 = vector.extract_strided_slice %32 {offsets = [0, 96], sizes = [16, 32], strides = [1, 1]} : vector<16x128xf32> to vector<16x32xf32>
    %36 = vector.extract_strided_slice %27 {offsets = [0, 64], sizes = [16, 32], strides = [1, 1]} : vector<16x128xf32> to vector<16x32xf32>
    %37 = math.tanh %36 : vector<16x32xf32>
    %38 = arith.mulf %34, %21 : vector<16x32xf32>
    %39 = arith.mulf %33, %37 : vector<16x32xf32>
    %40 = arith.addf %38, %39 : vector<16x32xf32>
    %41 = math.tanh %40 : vector<16x32xf32>
    %42 = arith.mulf %35, %41 : vector<16x32xf32>
    %43 = tpu.concatenate %42, %42 in 1 : vector<16x32xf32>, vector<16x32xf32> -> vector<16x64xf32>
    %44 = arith.mulf %43, %19 : vector<16x64xf32>
    %45 = arith.truncf %44 : vector<16x64xf32> to vector<16x64xbf16>
    %cst_15 = arith.constant dense<0.000000e+00> : vector<16x128xf32>
    %46 = tpu.matmul %45, %18, %cst_15 {dimension_numbers = #tpu.dot_dimension_numbers<[1], [0], [0], [1], [0, 0, 1, 1], [], []>} : vector<16x64xbf16>, vector<64x128xbf16>, vector<16x128xf32> -> vector<16x128xf32>
    %47 = vector.extract_strided_slice %16 {offsets = [16, 0], sizes = [16, 128], strides = [1, 1]} : vector<128x128xf32> to vector<16x128xf32>
    %48 = arith.addf %47, %46 : vector<16x128xf32>
    %49 = arith.negf %48 : vector<16x128xf32>
    %50 = math.exp %49 : vector<16x128xf32>
    %cst_16 = arith.constant 1.000000e+00 : f32
    %51 = vector.broadcast %cst_16 : f32 to vector<16x128xf32>
    %52 = arith.addf %51, %50 : vector<16x128xf32>
    %53 = arith.divf %51, %52 : vector<16x128xf32>
    %54 = vector.extract_strided_slice %53 {offsets = [0, 0], sizes = [16, 32], strides = [1, 1]} : vector<16x128xf32> to vector<16x32xf32>
    %55 = vector.extract_strided_slice %53 {offsets = [0, 32], sizes = [16, 32], strides = [1, 1]} : vector<16x128xf32> to vector<16x32xf32>
    %56 = vector.extract_strided_slice %53 {offsets = [0, 96], sizes = [16, 32], strides = [1, 1]} : vector<16x128xf32> to vector<16x32xf32>
    %57 = vector.extract_strided_slice %48 {offsets = [0, 64], sizes = [16, 32], strides = [1, 1]} : vector<16x128xf32> to vector<16x32xf32>
    %58 = math.tanh %57 : vector<16x32xf32>
    %59 = arith.mulf %55, %40 : vector<16x32xf32>
    %60 = arith.mulf %54, %58 : vector<16x32xf32>
    %61 = arith.addf %59, %60 : vector<16x32xf32>
    %62 = math.tanh %61 : vector<16x32xf32>
    %63 = arith.mulf %56, %62 : vector<16x32xf32>
    %64 = tpu.concatenate %63, %63 in 1 : vector<16x32xf32>, vector<16x32xf32> -> vector<16x64xf32>
    %65 = arith.mulf %64, %19 : vector<16x64xf32>
    %66 = arith.truncf %65 : vector<16x64xf32> to vector<16x64xbf16>
    %cst_17 = arith.constant dense<0.000000e+00> : vector<16x128xf32>
    %67 = tpu.matmul %66, %18, %cst_17 {dimension_numbers = #tpu.dot_dimension_numbers<[1], [0], [0], [1], [0, 0, 1, 1], [], []>} : vector<16x64xbf16>, vector<64x128xbf16>, vector<16x128xf32> -> vector<16x128xf32>
    %68 = vector.extract_strided_slice %16 {offsets = [32, 0], sizes = [16, 128], strides = [1, 1]} : vector<128x128xf32> to vector<16x128xf32>
    %69 = arith.addf %68, %67 : vector<16x128xf32>
    %70 = arith.negf %69 : vector<16x128xf32>
    %71 = math.exp %70 : vector<16x128xf32>
    %cst_18 = arith.constant 1.000000e+00 : f32
    %72 = vector.broadcast %cst_18 : f32 to vector<16x128xf32>
    %73 = arith.addf %72, %71 : vector<16x128xf32>
    %74 = arith.divf %72, %73 : vector<16x128xf32>
    %75 = vector.extract_strided_slice %74 {offsets = [0, 0], sizes = [16, 32], strides = [1, 1]} : vector<16x128xf32> to vector<16x32xf32>
    %76 = vector.extract_strided_slice %74 {offsets = [0, 32], sizes = [16, 32], strides = [1, 1]} : vector<16x128xf32> to vector<16x32xf32>
    %77 = vector.extract_strided_slice %74 {offsets = [0, 96], sizes = [16, 32], strides = [1, 1]} : vector<16x128xf32> to vector<16x32xf32>
    %78 = vector.extract_strided_slice %69 {offsets = [0, 64], sizes = [16, 32], strides = [1, 1]} : vector<16x128xf32> to vector<16x32xf32>
    %79 = math.tanh %78 : vector<16x32xf32>
    %80 = arith.mulf %76, %61 : vector<16x32xf32>
    %81 = arith.mulf %75, %79 : vector<16x32xf32>
    %82 = arith.addf %80, %81 : vector<16x32xf32>
    %83 = math.tanh %82 : vector<16x32xf32>
    %84 = arith.mulf %77, %83 : vector<16x32xf32>
    %85 = tpu.concatenate %84, %84 in 1 : vector<16x32xf32>, vector<16x32xf32> -> vector<16x64xf32>
    %86 = arith.mulf %85, %19 : vector<16x64xf32>
    %87 = arith.truncf %86 : vector<16x64xf32> to vector<16x64xbf16>
    %cst_19 = arith.constant dense<0.000000e+00> : vector<16x128xf32>
    %88 = tpu.matmul %87, %18, %cst_19 {dimension_numbers = #tpu.dot_dimension_numbers<[1], [0], [0], [1], [0, 0, 1, 1], [], []>} : vector<16x64xbf16>, vector<64x128xbf16>, vector<16x128xf32> -> vector<16x128xf32>
    %89 = vector.extract_strided_slice %16 {offsets = [48, 0], sizes = [16, 128], strides = [1, 1]} : vector<128x128xf32> to vector<16x128xf32>
    %90 = arith.addf %89, %88 : vector<16x128xf32>
    %91 = arith.negf %90 : vector<16x128xf32>
    %92 = math.exp %91 : vector<16x128xf32>
    %cst_20 = arith.constant 1.000000e+00 : f32
    %93 = vector.broadcast %cst_20 : f32 to vector<16x128xf32>
    %94 = arith.addf %93, %92 : vector<16x128xf32>
    %95 = arith.divf %93, %94 : vector<16x128xf32>
    %96 = vector.extract_strided_slice %95 {offsets = [0, 0], sizes = [16, 32], strides = [1, 1]} : vector<16x128xf32> to vector<16x32xf32>
    %97 = vector.extract_strided_slice %95 {offsets = [0, 32], sizes = [16, 32], strides = [1, 1]} : vector<16x128xf32> to vector<16x32xf32>
    %98 = vector.extract_strided_slice %95 {offsets = [0, 96], sizes = [16, 32], strides = [1, 1]} : vector<16x128xf32> to vector<16x32xf32>
    %99 = vector.extract_strided_slice %90 {offsets = [0, 64], sizes = [16, 32], strides = [1, 1]} : vector<16x128xf32> to vector<16x32xf32>
    %100 = math.tanh %99 : vector<16x32xf32>
    %101 = arith.mulf %97, %82 : vector<16x32xf32>
    %102 = arith.mulf %96, %100 : vector<16x32xf32>
    %103 = arith.addf %101, %102 : vector<16x32xf32>
    %104 = math.tanh %103 : vector<16x32xf32>
    %105 = arith.mulf %98, %104 : vector<16x32xf32>
    %106 = tpu.concatenate %105, %105 in 1 : vector<16x32xf32>, vector<16x32xf32> -> vector<16x64xf32>
    %107 = arith.mulf %106, %19 : vector<16x64xf32>
    %108 = arith.truncf %107 : vector<16x64xf32> to vector<16x64xbf16>
    %cst_21 = arith.constant dense<0.000000e+00> : vector<16x128xf32>
    %109 = tpu.matmul %108, %18, %cst_21 {dimension_numbers = #tpu.dot_dimension_numbers<[1], [0], [0], [1], [0, 0, 1, 1], [], []>} : vector<16x64xbf16>, vector<64x128xbf16>, vector<16x128xf32> -> vector<16x128xf32>
    %110 = vector.extract_strided_slice %16 {offsets = [64, 0], sizes = [16, 128], strides = [1, 1]} : vector<128x128xf32> to vector<16x128xf32>
    %111 = arith.addf %110, %109 : vector<16x128xf32>
    %112 = arith.negf %111 : vector<16x128xf32>
    %113 = math.exp %112 : vector<16x128xf32>
    %cst_22 = arith.constant 1.000000e+00 : f32
    %114 = vector.broadcast %cst_22 : f32 to vector<16x128xf32>
    %115 = arith.addf %114, %113 : vector<16x128xf32>
    %116 = arith.divf %114, %115 : vector<16x128xf32>
    %117 = vector.extract_strided_slice %116 {offsets = [0, 0], sizes = [16, 32], strides = [1, 1]} : vector<16x128xf32> to vector<16x32xf32>
    %118 = vector.extract_strided_slice %116 {offsets = [0, 32], sizes = [16, 32], strides = [1, 1]} : vector<16x128xf32> to vector<16x32xf32>
    %119 = vector.extract_strided_slice %116 {offsets = [0, 96], sizes = [16, 32], strides = [1, 1]} : vector<16x128xf32> to vector<16x32xf32>
    %120 = vector.extract_strided_slice %111 {offsets = [0, 64], sizes = [16, 32], strides = [1, 1]} : vector<16x128xf32> to vector<16x32xf32>
    %121 = math.tanh %120 : vector<16x32xf32>
    %122 = arith.mulf %118, %103 : vector<16x32xf32>
    %123 = arith.mulf %117, %121 : vector<16x32xf32>
    %124 = arith.addf %122, %123 : vector<16x32xf32>
    %125 = math.tanh %124 : vector<16x32xf32>
    %126 = arith.mulf %119, %125 : vector<16x32xf32>
    %127 = tpu.concatenate %126, %126 in 1 : vector<16x32xf32>, vector<16x32xf32> -> vector<16x64xf32>
    %128 = arith.mulf %127, %19 : vector<16x64xf32>
    %129 = arith.truncf %128 : vector<16x64xf32> to vector<16x64xbf16>
    %cst_23 = arith.constant dense<0.000000e+00> : vector<16x128xf32>
    %130 = tpu.matmul %129, %18, %cst_23 {dimension_numbers = #tpu.dot_dimension_numbers<[1], [0], [0], [1], [0, 0, 1, 1], [], []>} : vector<16x64xbf16>, vector<64x128xbf16>, vector<16x128xf32> -> vector<16x128xf32>
    %131 = vector.extract_strided_slice %16 {offsets = [80, 0], sizes = [16, 128], strides = [1, 1]} : vector<128x128xf32> to vector<16x128xf32>
    %132 = arith.addf %131, %130 : vector<16x128xf32>
    %133 = arith.negf %132 : vector<16x128xf32>
    %134 = math.exp %133 : vector<16x128xf32>
    %cst_24 = arith.constant 1.000000e+00 : f32
    %135 = vector.broadcast %cst_24 : f32 to vector<16x128xf32>
    %136 = arith.addf %135, %134 : vector<16x128xf32>
    %137 = arith.divf %135, %136 : vector<16x128xf32>
    %138 = vector.extract_strided_slice %137 {offsets = [0, 0], sizes = [16, 32], strides = [1, 1]} : vector<16x128xf32> to vector<16x32xf32>
    %139 = vector.extract_strided_slice %137 {offsets = [0, 32], sizes = [16, 32], strides = [1, 1]} : vector<16x128xf32> to vector<16x32xf32>
    %140 = vector.extract_strided_slice %137 {offsets = [0, 96], sizes = [16, 32], strides = [1, 1]} : vector<16x128xf32> to vector<16x32xf32>
    %141 = vector.extract_strided_slice %132 {offsets = [0, 64], sizes = [16, 32], strides = [1, 1]} : vector<16x128xf32> to vector<16x32xf32>
    %142 = math.tanh %141 : vector<16x32xf32>
    %143 = arith.mulf %139, %124 : vector<16x32xf32>
    %144 = arith.mulf %138, %142 : vector<16x32xf32>
    %145 = arith.addf %143, %144 : vector<16x32xf32>
    %146 = math.tanh %145 : vector<16x32xf32>
    %147 = arith.mulf %140, %146 : vector<16x32xf32>
    %148 = tpu.concatenate %147, %147 in 1 : vector<16x32xf32>, vector<16x32xf32> -> vector<16x64xf32>
    %149 = arith.mulf %148, %19 : vector<16x64xf32>
    %150 = arith.truncf %149 : vector<16x64xf32> to vector<16x64xbf16>
    %cst_25 = arith.constant dense<0.000000e+00> : vector<16x128xf32>
    %151 = tpu.matmul %150, %18, %cst_25 {dimension_numbers = #tpu.dot_dimension_numbers<[1], [0], [0], [1], [0, 0, 1, 1], [], []>} : vector<16x64xbf16>, vector<64x128xbf16>, vector<16x128xf32> -> vector<16x128xf32>
    %152 = vector.extract_strided_slice %16 {offsets = [96, 0], sizes = [16, 128], strides = [1, 1]} : vector<128x128xf32> to vector<16x128xf32>
    %153 = arith.addf %152, %151 : vector<16x128xf32>
    %154 = arith.negf %153 : vector<16x128xf32>
    %155 = math.exp %154 : vector<16x128xf32>
    %cst_26 = arith.constant 1.000000e+00 : f32
    %156 = vector.broadcast %cst_26 : f32 to vector<16x128xf32>
    %157 = arith.addf %156, %155 : vector<16x128xf32>
    %158 = arith.divf %156, %157 : vector<16x128xf32>
    %159 = vector.extract_strided_slice %158 {offsets = [0, 0], sizes = [16, 32], strides = [1, 1]} : vector<16x128xf32> to vector<16x32xf32>
    %160 = vector.extract_strided_slice %158 {offsets = [0, 32], sizes = [16, 32], strides = [1, 1]} : vector<16x128xf32> to vector<16x32xf32>
    %161 = vector.extract_strided_slice %158 {offsets = [0, 96], sizes = [16, 32], strides = [1, 1]} : vector<16x128xf32> to vector<16x32xf32>
    %162 = vector.extract_strided_slice %153 {offsets = [0, 64], sizes = [16, 32], strides = [1, 1]} : vector<16x128xf32> to vector<16x32xf32>
    %163 = math.tanh %162 : vector<16x32xf32>
    %164 = arith.mulf %160, %145 : vector<16x32xf32>
    %165 = arith.mulf %159, %163 : vector<16x32xf32>
    %166 = arith.addf %164, %165 : vector<16x32xf32>
    %167 = math.tanh %166 : vector<16x32xf32>
    %168 = arith.mulf %161, %167 : vector<16x32xf32>
    %169 = tpu.concatenate %168, %168 in 1 : vector<16x32xf32>, vector<16x32xf32> -> vector<16x64xf32>
    %170 = arith.mulf %169, %19 : vector<16x64xf32>
    %171 = arith.truncf %170 : vector<16x64xf32> to vector<16x64xbf16>
    %cst_27 = arith.constant dense<0.000000e+00> : vector<16x128xf32>
    %172 = tpu.matmul %171, %18, %cst_27 {dimension_numbers = #tpu.dot_dimension_numbers<[1], [0], [0], [1], [0, 0, 1, 1], [], []>} : vector<16x64xbf16>, vector<64x128xbf16>, vector<16x128xf32> -> vector<16x128xf32>
    %173 = vector.extract_strided_slice %16 {offsets = [112, 0], sizes = [16, 128], strides = [1, 1]} : vector<128x128xf32> to vector<16x128xf32>
    %174 = arith.addf %173, %172 : vector<16x128xf32>
    %175 = arith.negf %174 : vector<16x128xf32>
    %176 = math.exp %175 : vector<16x128xf32>
    %cst_28 = arith.constant 1.000000e+00 : f32
    %177 = vector.broadcast %cst_28 : f32 to vector<16x128xf32>
    %178 = arith.addf %177, %176 : vector<16x128xf32>
    %179 = arith.divf %177, %178 : vector<16x128xf32>
    %180 = vector.extract_strided_slice %179 {offsets = [0, 0], sizes = [16, 32], strides = [1, 1]} : vector<16x128xf32> to vector<16x32xf32>
    %181 = vector.extract_strided_slice %179 {offsets = [0, 32], sizes = [16, 32], strides = [1, 1]} : vector<16x128xf32> to vector<16x32xf32>
    %182 = vector.extract_strided_slice %179 {offsets = [0, 96], sizes = [16, 32], strides = [1, 1]} : vector<16x128xf32> to vector<16x32xf32>
    %183 = vector.extract_strided_slice %174 {offsets = [0, 64], sizes = [16, 32], strides = [1, 1]} : vector<16x128xf32> to vector<16x32xf32>
    %184 = math.tanh %183 : vector<16x32xf32>
    %185 = arith.mulf %181, %166 : vector<16x32xf32>
    %186 = arith.mulf %180, %184 : vector<16x32xf32>
    %187 = arith.addf %185, %186 : vector<16x32xf32>
    %188 = math.tanh %187 : vector<16x32xf32>
    %189 = arith.mulf %182, %188 : vector<16x32xf32>
    %190 = vector.extract_strided_slice %189 {offsets = [0, 0], sizes = [8, 32], strides = [1, 1]} : vector<16x32xf32> to vector<8x32xf32>
    %191 = arith.truncf %189 : vector<16x32xf32> to vector<16x32xbf16>
    %c568 = arith.constant 568 : index
    %c0_29 = arith.constant 0 : index
    %192 = vector.load %arg2[%c568, %c0_29] : memref<664x128xf32, #tpu.memory_space<vmem>>, vector<32x96xf32>
    %193 = arith.truncf %192 : vector<32x96xf32> to vector<32x96xbf16>
    %cst_30 = arith.constant dense<0.000000e+00> : vector<16x96xf32>
    %194 = tpu.matmul %191, %193, %cst_30 {dimension_numbers = #tpu.dot_dimension_numbers<[1], [0], [0], [1], [0, 0, 1, 1], [], []>} : vector<16x32xbf16>, vector<32x96xbf16>, vector<16x96xf32> -> vector<16x96xf32>
    %195 = vector.extract_strided_slice %194 {offsets = [0, 0], sizes = [8, 32], strides = [1, 1]} : vector<16x96xf32> to vector<8x32xf32>
    %196 = vector.extract_strided_slice %194 {offsets = [8, 32], sizes = [8, 32], strides = [1, 1]} : vector<16x96xf32> to vector<8x32xf32>
    %197 = vector.extract_strided_slice %194 {offsets = [8, 64], sizes = [8, 32], strides = [1, 1]} : vector<16x96xf32> to vector<8x32xf32>
    %c400 = arith.constant 400 : index
    %c0_31 = arith.constant 0 : index
    %198 = vector.load %arg2[%c400, %c0_31] : memref<664x128xf32, #tpu.memory_space<vmem>>, vector<8x8xf32>
    %c408 = arith.constant 408 : index
    %c0_32 = arith.constant 0 : index
    %199 = vector.load %arg2[%c408, %c0_32] : memref<664x128xf32, #tpu.memory_space<vmem>>, vector<8x8xf32>
    %c416 = arith.constant 416 : index
    %c0_33 = arith.constant 0 : index
    %200 = vector.load %arg2[%c416, %c0_33] : memref<664x128xf32, #tpu.memory_space<vmem>>, vector<32x4xf32>
    %c448 = arith.constant 448 : index
    %c0_34 = arith.constant 0 : index
    %201 = vector.load %arg2[%c448, %c0_34] : memref<664x128xf32, #tpu.memory_space<vmem>>, vector<4x32xf32>
    %cst_35 = arith.constant dense<0.000000e+00> : vector<8x32xf32>
    %202 = tpu.matmul %198, %195, %cst_35 {dimension_numbers = #tpu.dot_dimension_numbers<[1], [0], [0], [1], [0, 0, 1, 1], [], []>} : vector<8x8xf32>, vector<8x32xf32>, vector<8x32xf32> -> vector<8x32xf32>
    %203 = arith.mulf %202, %196 : vector<8x32xf32>
    %cst_36 = arith.constant dense<0.000000e+00> : vector<8x4xf32>
    %204 = tpu.matmul %203, %200, %cst_36 {dimension_numbers = #tpu.dot_dimension_numbers<[1], [0], [0], [1], [0, 0, 1, 1], [], []>} : vector<8x32xf32>, vector<32x4xf32>, vector<8x4xf32> -> vector<8x4xf32>
    %cst_37 = arith.constant 0.353553385 : f32
    %205 = vector.broadcast %cst_37 : f32 to vector<8x4xf32>
    %206 = arith.mulf %204, %205 : vector<8x4xf32>
    %207 = tpu.iota {dimensions = array<i32: 0>} : vector<8x4xi32>
    %cst_38 = arith.constant 0.000000e+00 : f32
    %208 = vector.broadcast %cst_38 : f32 to vector<8x4xf32>
    %c0_i32 = arith.constant 0 : i32
    %209 = vector.broadcast %c0_i32 : i32 to vector<8x4xi32>
    %210 = arith.cmpi sge, %207, %209 : vector<8x4xi32>
    %c4_i32 = arith.constant 4 : i32
    %211 = vector.broadcast %c4_i32 : i32 to vector<8x4xi32>
    %212 = arith.cmpi slt, %207, %211 : vector<8x4xi32>
    %213 = arith.andi %210, %212 : vector<8x4xi1>
    %cst_39 = arith.constant -1.000000e+30 : f32
    %214 = vector.broadcast %cst_39 : f32 to vector<8x4xf32>
    %215 = arith.select %213, %206, %214 : vector<8x4xi1>, vector<8x4xf32>
    %cst_40 = arith.constant dense<0xFF800000> : vector<4xf32>
    %216 = vector.multi_reduction <maximumf>, %215, %cst_40 [0] : vector<8x4xf32> to vector<4xf32>
    %217 = vector.shape_cast %216 : vector<4xf32> to vector<1x4xf32>
    %218 = vector.shape_cast %217 : vector<1x4xf32> to vector<1x4xf32>
    %219 = vector.broadcast %218 : vector<1x4xf32> to vector<8x4xf32>
    %220 = arith.select %213, %219, %208 : vector<8x4xi1>, vector<8x4xf32>
    %c4_i32_41 = arith.constant 4 : i32
    %221 = vector.broadcast %c4_i32_41 : i32 to vector<8x4xi32>
    %222 = arith.cmpi sge, %207, %221 : vector<8x4xi32>
    %c8_i32 = arith.constant 8 : i32
    %223 = vector.broadcast %c8_i32 : i32 to vector<8x4xi32>
    %224 = arith.cmpi slt, %207, %223 : vector<8x4xi32>
    %225 = arith.andi %222, %224 : vector<8x4xi1>
    %cst_42 = arith.constant -1.000000e+30 : f32
    %226 = vector.broadcast %cst_42 : f32 to vector<8x4xf32>
    %227 = arith.select %225, %206, %226 : vector<8x4xi1>, vector<8x4xf32>
    %cst_43 = arith.constant dense<0xFF800000> : vector<4xf32>
    %228 = vector.multi_reduction <maximumf>, %227, %cst_43 [0] : vector<8x4xf32> to vector<4xf32>
    %229 = vector.shape_cast %228 : vector<4xf32> to vector<1x4xf32>
    %230 = vector.shape_cast %229 : vector<1x4xf32> to vector<1x4xf32>
    %231 = vector.broadcast %230 : vector<1x4xf32> to vector<8x4xf32>
    %232 = arith.select %225, %231, %220 : vector<8x4xi1>, vector<8x4xf32>
    %233 = arith.subf %206, %232 : vector<8x4xf32>
    %234 = math.exp %233 : vector<8x4xf32>
    %cst_44 = arith.constant dense<0.000000e+00> : vector<8x4xf32>
    %235 = tpu.matmul %199, %234, %cst_44 {dimension_numbers = #tpu.dot_dimension_numbers<[1], [0], [0], [1], [0, 0, 1, 1], [], []>} : vector<8x8xf32>, vector<8x4xf32>, vector<8x4xf32> -> vector<8x4xf32>
    %cst_45 = arith.constant 0.000000e+00 : f32
    %236 = vector.broadcast %cst_45 : f32 to vector<8x4xf32>
    %237 = arith.cmpf ogt, %235, %236 : vector<8x4xf32>
    %cst_46 = arith.constant 1.000000e+00 : f32
    %238 = vector.broadcast %cst_46 : f32 to vector<8x4xf32>
    %239 = arith.select %237, %235, %238 : vector<8x4xi1>, vector<8x4xf32>
    %240 = tpu.reciprocal %239 {approx = true} : vector<8x4xf32> -> vector<8x4xf32>
    %cst_47 = arith.constant dense<0.000000e+00> : vector<8x4xf32>
    %241 = tpu.matmul %198, %240, %cst_47 {dimension_numbers = #tpu.dot_dimension_numbers<[1], [0], [0], [1], [0, 0, 1, 1], [], []>} : vector<8x8xf32>, vector<8x4xf32>, vector<8x4xf32> -> vector<8x4xf32>
    %242 = arith.mulf %234, %241 : vector<8x4xf32>
    %cst_48 = arith.constant dense<0.000000e+00> : vector<8x32xf32>
    %243 = tpu.matmul %242, %201, %cst_48 {dimension_numbers = #tpu.dot_dimension_numbers<[1], [0], [0], [1], [0, 0, 1, 1], [], []>} : vector<8x4xf32>, vector<4x32xf32>, vector<8x32xf32> -> vector<8x32xf32>
    %244 = arith.mulf %243, %197 : vector<8x32xf32>
    %cst_49 = arith.constant dense<0.000000e+00> : vector<8x32xf32>
    %245 = tpu.matmul %199, %244, %cst_49 {dimension_numbers = #tpu.dot_dimension_numbers<[1], [0], [0], [1], [0, 0, 1, 1], [], []>} : vector<8x8xf32>, vector<8x32xf32>, vector<8x32xf32> -> vector<8x32xf32>
    %246 = arith.truncf %245 : vector<8x32xf32> to vector<8x32xbf16>
    %c600 = arith.constant 600 : index
    %c0_50 = arith.constant 0 : index
    %247 = vector.load %arg2[%c600, %c0_50] : memref<664x128xf32, #tpu.memory_space<vmem>>, vector<32x32xf32>
    %248 = arith.truncf %247 : vector<32x32xf32> to vector<32x32xbf16>
    %cst_51 = arith.constant dense<0.000000e+00> : vector<8x32xf32>
    %249 = tpu.matmul %246, %248, %cst_51 {dimension_numbers = #tpu.dot_dimension_numbers<[1], [0], [0], [1], [0, 0, 1, 1], [], []>} : vector<8x32xbf16>, vector<32x32xbf16>, vector<8x32xf32> -> vector<8x32xf32>
    %250 = arith.addf %190, %249 : vector<8x32xf32>
    %251 = arith.truncf %250 : vector<8x32xf32> to vector<8x32xbf16>
    %c632 = arith.constant 632 : index
    %c0_52 = arith.constant 0 : index
    %252 = vector.load %arg2[%c632, %c0_52] : memref<664x128xf32, #tpu.memory_space<vmem>>, vector<32x128xf32>
    %253 = arith.truncf %252 : vector<32x128xf32> to vector<32x128xbf16>
    %cst_53 = arith.constant dense<0.000000e+00> : vector<8x128xf32>
    %254 = tpu.matmul %251, %253, %cst_53 {dimension_numbers = #tpu.dot_dimension_numbers<[1], [0], [0], [1], [0, 0, 1, 1], [], []>} : vector<8x32xbf16>, vector<32x128xbf16>, vector<8x128xf32> -> vector<8x128xf32>
    %c456 = arith.constant 456 : index
    %c0_54 = arith.constant 0 : index
    %255 = vector.load %arg2[%c456, %c0_54] : memref<664x128xf32, #tpu.memory_space<vmem>>, vector<8x128xf32>
    %256 = arith.addf %254, %255 : vector<8x128xf32>
    %c0_55 = arith.constant 0 : index
    %c0_56 = arith.constant 0 : index
    %257 = vector.load %arg3[%c0_55, %c0_56] : memref<8x128xf32, #tpu.memory_space<vmem>>, vector<8x128xf32>
    tpu.vector_store %arg3[%c0_55, %c0_56], %256 {strides = array<i32>} : memref<8x128xf32, #tpu.memory_space<vmem>>, vector<8x128xf32>,
    return
  }
  func.func @transform_0(%arg0: i32) -> (i32, i32) {
    %c0_i32 = arith.constant 0 : i32
    %c0_i32_0 = arith.constant 0 : i32
    %c0_i32_1 = arith.constant 0 : i32
    return %c0_i32, %c0_i32_0 : i32, i32
  }
  func.func @transform_1(%arg0: i32) -> (i32, i32) {
    %c0_i32 = arith.constant 0 : i32
    %c0_i32_0 = arith.constant 0 : i32
    %c0_i32_1 = arith.constant 0 : i32
    return %c0_i32, %c0_i32_0 : i32, i32
  }
  func.func @transform_2(%arg0: i32) -> (i32, i32) {
    %c0_i32 = arith.constant 0 : i32
    %c0_i32_0 = arith.constant 0 : i32
    %c0_i32_1 = arith.constant 0 : i32
    return %c0_i32, %c0_i32_0 : i32, i32
  }
}

</mosaic_0001>

<bundles_post_ra>
// kernel: road_prediction_forward.1
= control target key start
LH: loop header
LB: loop body
LE: loop exit
PB: predicated region body
PF: predicated region fallthrough
CT: control target
= control target key end

     0   :  { %7 = vsyncpa [#allocation3], 0  ;;  %s1685_s12 = smov [#allocation2]   ;;  %s1686_s14 = smov 128   ;;  %s2020_s0 = inlined_call_operand.vmem [shape: f32[128,8], index: 0, kind: input, shape index: {}]   ;;  %s2021_s1 = inlined_call_operand.hbm [shape: f32[664,128], index: 1, kind: input, shape index: {}]   ;;  %s2022_s2 = inlined_call_operand.vmem [shape: f32[8,128], index: 2, kind: output, shape index: {}]  }
   0x1   :  { %s14_s11 = sshll.u32 %s2021_s1, 4  ;;  %s16_s13 = sshll.u32 %s1685_s12, 4  ;;  %s15_s11 = int_to_ptr.hbm [resolvable:$true] %s14_s11  ;;  %s17_s13 = int_to_ptr.vmem [resolvable:$true] %s16_s13 }
   0x2   :  { %s1687_s15 = smov 8  }
   0x3   :  { %22 = dma.hbm_to_vmem [thread:$0]  %s15_s11, 10624, %s17_s13, [#allocation3], %s1686_s14, %s1686_s14, %s1687_s15  }
   0x4   :  { %1683 = dma.done.wait [#allocation3], 10624  }
   0x5   :  { %1684 = vsyncadd [#allocation3], 4294956672  ;;  %v84_v0 = vld [vmem:[#allocation2 + $0x1d0] sm:$0xff]  ;;  %vm127_vm0 = vcmask 1043456   ;;  %v28_v1 = vld [vmem:[%s2020_s0] sm:$0xff]  ;;  %vm102_vm1 = vcmask 64512  }
   0x6   :  { %v29_v2 = vld [vmem:[%s2020_s0 + $0x8] sm:$0xff]  ;;  %v85_v3 = vpack.c.bf16 %v84_v0, %v84_v0  ;;  %v44_v4 = vld [vmem:[#allocation2] sm:$0xff]  ;;  %v307_v9 = vld [vmem:[#allocation2 + $0x230] sm:$0xff]  ;;  %vm317_vm2 = vcmask 523264   ;;  %vm226_vm3 = vcmask 261120   ;;  %s1688_s1 = smov 64  }
   0x7   :  { %v45_v5 = vld [vmem:[#allocation2 + $0x8] sm:$0xff]  ;;  %v60_v7 = vmul.f32 %v44_v4, %v28_v1  ;;  %v304_v10 = vld [vmem:[#allocation2 + $0x218] sm:$0xff]  ;;  %v305_v11 = vld [vmem:[#allocation2 + $0x220] sm:$0xff]  ;;  %s1689_s20 = smov 32  }
   0x8   :  { %v306_v6 = vld [vmem:[#allocation2 + $0x228] sm:$0xff]  ;;  %v61_v8 = vmul.f32 %v45_v5, %v29_v2  ;;  %v129_v12 = vsel %vm127_vm0, %v85_v3, 0  ;;  %v1719_v15 = vpack.c.bf16 %v305_v11, %v304_v10  ;;  %v303_v17 = vld [vmem:[#allocation2 + $0x210] sm:$0xff]  ;;  %v300_v19 = vld [vmem:[#allocation2 + $0x1f8] sm:$0xff] }
   0x9   :  { %v1716_v13 = vpack.c.bf16 %v307_v9, %v306_v6  ;;  %138 = vmatpush.bf16.msra.mxu0 %v129_v12  ;;  %v302_v16 = vld [vmem:[#allocation2 + $0x208] sm:$0xff]  ;;  %v301_v20 = vld [vmem:[#allocation2 + $0x200] sm:$0xff]  ;;  %v207_v28 = vld [vmem:[#allocation2 + $0x1f0] sm:$0xff] }
   0xa   :  { %v76_v14 = vpack.c.bf16 %v61_v8, %v60_v7  ;;  %v1724_v18 = vpack.c.bf16 %v303_v17, %v302_v16  ;;  %v1729_v21 = vpack.c.bf16 %v301_v20, %v300_v19  ;;  %v1731_v22 = vld [vmem:[#allocation2 + $0x180] sm:$0xff]  ;;  %v1733_v23 = vld [vmem:[#allocation2 + $0x188] sm:$0xff]  ;;  %v204_v30 = vld [vmem:[#allocation2 + $0x1d8] sm:$0xff] }
   0xb   :  { %325 = vmatpush.bf16.msra.mxu2 %v1716_v13  ;;  %437 = vmatpush.bf16.msra.mxu3 %v1716_v13  ;;  %v314_v24 = vmul.f32 0.0, %v1731_v22  ;;  %v315_v25 = vmul.f32 0.0, %v1733_v23  ;;  %v206_v27 = vld [vmem:[#allocation2 + $0x1e8] sm:$0xff]  ;;  %v205_v31 = vld [vmem:[#allocation2 + $0x1e0] sm:$0xff] }
   0xc   :  { %1469 = vmatmul.msk.bf16.vlgmr.msra.gmra.mxu0 %vm102_vm1, %v76_v14  ;;  %v209_v29 = vpack.c.bf16 %v207_v28, %v206_v27  ;;  %v208_v32 = vpack.c.bf16 %v205_v31, %v204_v30  ;;  %v86_v34 = vld [vmem:[#allocation2 + $0x80] sm:$0xff]  ;;  %v87_v35 = vld [vmem:[#allocation2 + $0x88] sm:$0xff]  ;;  %v31_v27 = vld [vmem:[%s2020_s0 + $0x18] sm:$0xff] }
   0xd   :  { %v316_v26 = vpack.c.bf16 %v315_v25, %v314_v24  ;;  %v210_v42 = vld [vmem:[#allocation2 + $0x100] sm:$0xff]  ;;  %v211_v47 = vld [vmem:[#allocation2 + $0x108] sm:$0xff]  ;;  %v46_v28 = vld [vmem:[#allocation2 + $0x10] sm:$0xff] }
   0xe   :  { %257 = vmatpush.bf16.msra.mxu1 %v209_v29  ;;  %v47_v29 = vld [vmem:[#allocation2 + $0x18] sm:$0xff] }
   0xf   :  { %326 = vmatpush.bf16.msra.mxu2 %v1719_v15  ;;  %438 = vmatpush.bf16.msra.mxu3 %v1719_v15  ;;  %v63_v31 = vmul.f32 %v47_v29, %v31_v27 }
  0x12   :  { %258 = vmatpush.bf16.msra.mxu1 %v208_v32 }
  0x13   :  { %327 = vmatpush.bf16.msra.mxu2 %v1724_v18  ;;  %439 = vmatpush.bf16.msra.mxu3 %v1724_v18 }
  0x17   :  { %328 = vmatpush.bf16.msra.mxu2 %v1729_v21  ;;  %440 = vmatpush.bf16.msra.mxu3 %v1729_v21 }
  0x1a   :  { %1485 = vmatmul.msk.bf16.vlgmr.msra.gmra.mxu2 %vm317_vm2, %v316_v26  ;;  %v30_v26 = vld [vmem:[%s2020_s0 + $0x10] sm:$0xff] }
  0x1b   :  { %549 = vmatpush.bf16.msrb.mxu2 %v1716_v13  ;;  %661 = vmatpush.bf16.msrb.mxu3 %v1716_v13  ;;  %v62_v30 = vmul.f32 %v46_v28, %v30_v26 }
  0x1d   :  { %v77_v32 = vpack.c.bf16 %v63_v31, %v62_v30 }
  0x1f   :  { %550 = vmatpush.bf16.msrb.mxu2 %v1719_v15  ;;  %662 = vmatpush.bf16.msrb.mxu3 %v1719_v15 }
  0x20   :  { %1470 = vmatmul.msk.bf16.gmra.mxu0 %vm102_vm1, %v77_v32 }
  0x23   :  { %551 = vmatpush.bf16.msrb.mxu2 %v1724_v18  ;;  %663 = vmatpush.bf16.msrb.mxu3 %v1724_v18 }
  0x27   :  { %552 = vmatpush.bf16.msrb.mxu2 %v1729_v21  ;;  %664 = vmatpush.bf16.msrb.mxu3 %v1729_v21 }
  0x2b   :  { %773 = vmatpush.bf16.msra.mxu2 %v1716_v13 }
  0x2f   :  { %774 = vmatpush.bf16.msra.mxu2 %v1719_v15 }
  0x33   :  { %775 = vmatpush.bf16.msra.mxu2 %v1724_v18 }
  0x37   :  { %776 = vmatpush.bf16.msra.mxu2 %v1729_v21 }
  0x89   :  { %v140_v33 = vpop.f32.mrf.mxu0 }
  0x8a   :  { %v141_v36 = vadd.f32 %v140_v33, %v86_v34 }
  0x8c   :  { %v180_v39 = vmax.f32 %v141_v36, 0.0 }
  0x91   :  { %v142_v37 = vpop.f32.mrf.mxu0 }
  0x92   :  { %v143_v38 = vadd.f32 %v142_v37, %v87_v35 }
  0x94   :  { %v181_v40 = vmax.f32 %v143_v38, 0.0 }
  0x96   :  { %v196_v41 = vpack.c.bf16 %v181_v40, %v180_v39 }
  0x98   :  { %1477 = vmatmul.msk.bf16.vlgmr.msra.gmra.mxu1 %vm226_vm3, %v196_v41 }
  0x9d   :  { %v330_v43 = vpop.f32.mrf.mxu2 }
  0xa5   :  { %v332_v50 = vpop.f32.mrf.mxu2 }
 0x115   :  { %v260_v44 = vpop.f32.mrf.mxu1 }
 0x116   :  { %v261_v45 = vadd.f32 %v260_v44, %v210_v42 }
 0x118   :  { %v335_v46 = vadd.f32 %v330_v43, %v261_v45  ;;  %v145_v45 = vpop.f32.mrf.mxu0 }
 0x11a   :  { %1525 = vtanh.f32 %v335_v46  ;;  %v1486_v54 = vmul.f32 -1.442695, %v335_v46  ;;  %v88_v46 = vld [vmem:[#allocation2 + $0x90] sm:$0xff] }
 0x11d   :  { %v262_v48 = vpop.f32.mrf.mxu1 }
 0x11e   :  { %v263_v49 = vadd.f32 %v262_v48, %v211_v47  ;;  %v146_v47 = vadd.f32 %v145_v45, %v88_v46  ;;  %v89_v48 = vld [vmem:[#allocation2 + $0x98] sm:$0xff] }
 0x120   :  { %v1526_v51 = vpop.eup %1525  ;;  %v336_v52 = vadd.f32 %v332_v50, %v263_v49  ;;  %v147_v49 = vpop.f32.mrf.mxu0  ;;  %v182_v50 = vmax.f32 %v146_v47, 0.0 }
 0x121   :  { %381 = vrot.lane.b32.xlu0 %v1526_v51, %s1688_s1  ;;  %v148_v51 = vadd.f32 %v147_v49, %v89_v48  ;;  %v32_v49 = vld [vmem:[%s2020_s0 + $0x20] sm:$0xff] }
 0x122   :  { %1527 = vtanh.f32 %v336_v52  ;;  %v1487_v55 = vmul.f32 -1.442695, %v336_v52 }
 0x123   :  { %1529 = vpow2.f32 %v1486_v54  ;;  %v183_v52 = vmax.f32 %v148_v51, 0.0  ;;  %v48_v51 = vld [vmem:[#allocation2 + $0x20] sm:$0xff] }
 0x124   :  { %1531 = vpow2.f32 %v1487_v55 }
 0x128   :  { %v1528_v53 = vpop.eup %1527 }
 0x129   :  { %383 = vrot.lane.b32.xlu0 %v1528_v53, %s1688_s1  ;;  %v1530_v56 = vpop.eup %1529  ;;  %v197_v53 = vpack.c.bf16 %v183_v52, %v182_v50  ;;  %v33_v50 = vld [vmem:[%s2020_s0 + $0x28] sm:$0xff] }
 0x12a   :  { %v343_v57 = vadd.f32 1.0, %v1530_v56  ;;  %v1532_v58 = vpop.eup %1531  ;;  %v49_v52 = vld [vmem:[#allocation2 + $0x28] sm:$0xff] }
 0x12b   :  { %v344_v59 = vadd.f32 1.0, %v1532_v58  ;;  %1478 = vmatmul.msk.bf16.gmra.mxu1 %vm226_vm3, %v197_v53  ;;  %v64_v53 = vmul.f32 %v48_v51, %v32_v49 }
 0x12c   :  { %1533 = vrcp.f32 %v343_v57  ;;  %v356_v4 = vand.u32 2147483648, %v343_v57  ;;  %vm350_vm5 = vweird.f32 %v343_v57  ;;  %v354_v5 = vand.u32 2147483647, %v343_v57 }
 0x12d   :  { %1535 = vrcp.f32 %v344_v59  ;;  %v371_v14 = vand.u32 2147483648, %v344_v59  ;;  %vm365_vm9 = vweird.f32 %v344_v59  ;;  %v369_v16 = vand.u32 2147483647, %v344_v59 }
 0x12e   :  { %v357_v8 = vor.u32 1.1754944e-38, %v356_v4  ;;  %vm355_vm7 = vcmp.eq.f32.partialorder %v354_v5, 8.507059e+37  ;;  %v213_v4 = vld [vmem:[#allocation2 + $0x118] sm:$0xff] }
 0x12f   :  { %v372_v19 = vor.u32 1.1754944e-38, %v371_v14  ;;  %vm370_vm11 = vcmp.eq.f32.partialorder %v369_v16, 8.507059e+37 }
 0x132   :  { %v1534_v60 = vpop.eup %1533 }
 0x133   :  { %v346_v61 = vmul.f32 %v1534_v60, %v343_v57  ;;  %v1536_v63 = vpop.eup %1535  ;;  %vm351_vm4 = vweird.f32 %v1534_v60 }
 0x134   :  { %v361_v1 = vmul.f32 %v1536_v63, %v344_v59  ;;  %vm352_vm6 = vmor %vm350_vm5, %vm351_vm4  ;;  %vm366_vm8 = vweird.f32 %v1536_v63 }
 0x135   :  { %v347_v62 = vsub.f32 1.0, %v346_v61  ;;  %vm367_vm10 = vmor %vm365_vm9, %vm366_vm8 }
 0x136   :  { %v362_v3 = vsub.f32 1.0, %v361_v1 }
 0x137   :  { %v348_v0 = vmul.f32 %v1534_v60, %v347_v62 }
 0x138   :  { %v363_v7 = vmul.f32 %v1536_v63, %v362_v3 }
 0x139   :  { %v349_v2 = vadd.f32 %v1534_v60, %v348_v0  ;;  %v212_v0 = vld [vmem:[#allocation2 + $0x110] sm:$0xff] }
 0x13a   :  { %v364_v12 = vadd.f32 %v1536_v63, %v363_v7 }
 0x13b   :  { %v353_v6 = vsel %vm352_vm6, %v1534_v60, %v349_v2 }
 0x13c   :  { %v358_v10 = vsel %vm355_vm7, %v357_v8, %v353_v6  ;;  %v368_v17 = vsel %vm367_vm10, %v1536_v63, %v364_v12 }
 0x13d   :  { %v373_v20 = vsel %vm370_vm11, %v372_v19, %v368_v17  ;;  %v377_v33 = vmul.f32 0.0, %v358_v10 }
 0x13e   :  { %v378_v36 = vmul.f32 0.0, %v373_v20 }
 0x193   :  { %v382_v9 = vpop.permute.xlu0 %381 }
 0x194   :  { %v387_v11 = vmul.f32 %v382_v9, %v358_v10 }
 0x196   :  { %391 = vrot.lane.b32.xlu1 %v387_v11, %s1689_s20 }
 0x19b   :  { %v384_v24 = vpop.permute.xlu0 %383 }
 0x19c   :  { %v388_v25 = vmul.f32 %v384_v24, %v373_v20 }
 0x19e   :  { %393 = vrot.lane.b32.xlu1 %v388_v25, %s1689_s20 }
 0x1a8   :  { %v265_v63 = vpop.f32.mrf.mxu1 }
 0x1a9   :  { %v266_v1 = vadd.f32 %v265_v63, %v212_v0 }
 0x1b0   :  { %v267_v5 = vpop.f32.mrf.mxu1 }
 0x1b1   :  { %v268_v6 = vadd.f32 %v267_v5, %v213_v4  ;;  %v91_v5 = vld [vmem:[#allocation2 + $0xa8] sm:$0xff] }
 0x208   :  { %v392_v34 = vpop.permute.xlu1 %391 }
 0x209   :  { %v1764_v35 = vadd.f32 %v392_v34, %v377_v33 }
 0x20b   :  { %1537 = vtanh.f32 %v1764_v35 }
 0x210   :  { %v394_v37 = vpop.permute.xlu1 %393 }
 0x211   :  { %v1538_v38 = vpop.eup %1537  ;;  %v1767_v39 = vadd.f32 %v394_v37, %v378_v36 }
 0x212   :  { %403 = vrot.lane.b32.xlu2 %v1538_v38, %s1688_s1 }
 0x213   :  { %1539 = vtanh.f32 %v1767_v39 }
 0x219   :  { %v1540_v40 = vpop.eup %1539 }
 0x21a   :  { %405 = vrot.lane.b32.xlu2 %v1540_v40, %s1688_s1 }
 0x26c   :  { %v404_v41 = vpop.permute.xlu2 %403 }
 0x26d   :  { %v409_v42 = vmul.f32 %v404_v41, %v358_v10 }
 0x26f   :  { %419 = vrot.lane.b32.xlu2 %v409_v42, %s1688_s1  ;;  %413 = vrot.lane.b32.xlu0 %v409_v42, %s1689_s20 }
 0x274   :  { %v406_v43 = vpop.permute.xlu2 %405 }
 0x275   :  { %v410_v44 = vmul.f32 %v406_v43, %v373_v20 }
 0x277   :  { %421 = vrot.lane.b32.xlu0 %v410_v44, %s1688_s1  ;;  %415 = vrot.lane.b32.xlu1 %v410_v44, %s1689_s20 }
 0x2c9   :  { %v420_v55 = vpop.permute.xlu2 %419 }
 0x2e1   :  { %v414_v54 = vpop.permute.xlu0 %413 }
 0x2e2   :  { %v425_v56 = vsel %vm226_vm3, %v414_v54, %v420_v55  ;;  %v65_v54 = vmul.f32 %v49_v52, %v33_v50 }
 0x2e3   :  { %v427_v60 = vmul.f32 %v425_v56, %v1731_v22 }
 0x2e4   :  { %v78_v55 = vpack.c.bf16 %v65_v54, %v64_v53 }
 0x2e6   :  { %1471 = vmatmul.msk.bf16.gmra.mxu0 %vm102_vm1, %v78_v55 }
 0x2e9   :  { %v422_v57 = vpop.permute.xlu0 %421  ;;  %v416_v58 = vpop.permute.xlu1 %415 }
 0x2ea   :  { %v426_v59 = vsel %vm226_vm3, %v416_v58, %v422_v57 }
 0x2eb   :  { %v428_v61 = vmul.f32 %v426_v59, %v1733_v23 }
 0x2ed   :  { %v429_v62 = vpack.c.bf16 %v428_v61, %v427_v60 }
 0x2ef   :  { %1488 = vmatmul.msk.bf16.vlgmr.msra.gmra.mxu3 %vm317_vm2, %v429_v62 }
 0x2f0   :  { %885 = vmatpush.bf16.msra.mxu3 %v1716_v13 }
 0x2f4   :  { %886 = vmatpush.bf16.msra.mxu3 %v1719_v15 }
 0x2f8   :  { %887 = vmatpush.bf16.msra.mxu3 %v1724_v18 }
 0x2fc   :  { %888 = vmatpush.bf16.msra.mxu3 %v1729_v21 }
 0x372   :  { %v442_v2 = vpop.f32.mrf.mxu3 }
 0x373   :  { %v447_v3 = vadd.f32 %v442_v2, %v266_v1 }
 0x375   :  { %1541 = vtanh.f32 %v447_v3  ;;  %v1489_v16 = vmul.f32 -1.442695, %v447_v3  ;;  %v90_v3 = vld [vmem:[#allocation2 + $0xa0] sm:$0xff] }
 0x37a   :  { %v444_v7 = vpop.f32.mrf.mxu3 }
 0x37b   :  { %v1542_v8 = vpop.eup %1541  ;;  %v448_v9 = vadd.f32 %v444_v7, %v268_v6 }
 0x37c   :  { %493 = vrot.lane.b32.xlu1 %v1542_v8, %s1688_s1 }
 0x37d   :  { %1543 = vtanh.f32 %v448_v9  ;;  %v1490_v11 = vmul.f32 -1.442695, %v448_v9 }
 0x37f   :  { %1545 = vpow2.f32 %v1490_v11 }
 0x383   :  { %v1544_v10 = vpop.eup %1543 }
 0x384   :  { %495 = vrot.lane.b32.xlu2 %v1544_v10, %s1688_s1 }
 0x385   :  { %v1546_v12 = vpop.eup %1545 }
 0x386   :  { %v456_v14 = vadd.f32 1.0, %v1546_v12 }
 0x388   :  { %1547 = vrcp.f32 %v456_v14  ;;  %v483_v29 = vand.u32 2147483648, %v456_v14  ;;  %vm477_vm13 = vweird.f32 %v456_v14  ;;  %v481_v30 = vand.u32 2147483647, %v456_v14 }
 0x389   :  { %1549 = vpow2.f32 %v1489_v16 }
 0x38a   :  { %v484_v33 = vor.u32 1.1754944e-38, %v483_v29  ;;  %vm482_vm15 = vcmp.eq.f32.partialorder %v481_v30, 8.507059e+37 }
 0x38e   :  { %v1548_v17 = vpop.eup %1547 }
 0x38f   :  { %v1550_v19 = vpop.eup %1549  ;;  %v473_v20 = vmul.f32 %v1548_v17, %v456_v14  ;;  %vm478_vm12 = vweird.f32 %v1548_v17 }
 0x390   :  { %v455_v24 = vadd.f32 1.0, %v1550_v19  ;;  %vm479_vm14 = vmor %vm477_vm13, %vm478_vm12 }
 0x391   :  { %v474_v25 = vsub.f32 1.0, %v473_v20 }
 0x392   :  { %1551 = vrcp.f32 %v455_v24  ;;  %v468_v42 = vand.u32 2147483648, %v455_v24  ;;  %vm462_vm5 = vweird.f32 %v455_v24  ;;  %v466_v43 = vand.u32 2147483647, %v455_v24 }
 0x393   :  { %v475_v26 = vmul.f32 %v1548_v17, %v474_v25 }
 0x394   :  { %v469_v45 = vor.u32 1.1754944e-38, %v468_v42  ;;  %vm467_vm7 = vcmp.eq.f32.partialorder %v466_v43, 8.507059e+37 }
 0x395   :  { %v476_v27 = vadd.f32 %v1548_v17, %v475_v26 }
 0x397   :  { %v480_v31 = vsel %vm479_vm14, %v1548_v17, %v476_v27  ;;  %v214_v27 = vld [vmem:[#allocation2 + $0x120] sm:$0xff] }
 0x398   :  { %v1552_v28 = vpop.eup %1551  ;;  %v485_v36 = vsel %vm482_vm15, %v484_v33, %v480_v31  ;;  %v215_v31 = vld [vmem:[#allocation2 + $0x128] sm:$0xff] }
 0x399   :  { %v458_v32 = vmul.f32 %v1552_v28, %v455_v24  ;;  %vm463_vm4 = vweird.f32 %v1552_v28  ;;  %v490_v56 = vmul.f32 %v485_v36, %v1767_v39 }
 0x39a   :  { %vm464_vm6 = vmor %vm462_vm5, %vm463_vm4 }
 0x39b   :  { %v459_v38 = vsub.f32 1.0, %v458_v32 }
 0x39d   :  { %v460_v40 = vmul.f32 %v1552_v28, %v459_v38 }
 0x39f   :  { %v461_v41 = vadd.f32 %v1552_v28, %v460_v40 }
 0x3a1   :  { %v465_v44 = vsel %vm464_vm6, %v1552_v28, %v461_v41 }
 0x3a2   :  { %v470_v47 = vsel %vm467_vm7, %v469_v45, %v465_v44 }
 0x3a3   :  { %v489_v60 = vmul.f32 %v470_v47, %v1764_v35  ;;  %v150_v35 = vpop.f32.mrf.mxu0 }
 0x3a4   :  { %v151_v4 = vadd.f32 %v150_v35, %v90_v3 }
 0x3a6   :  { %v184_v7 = vmax.f32 %v151_v4, 0.0 }
 0x3ab   :  { %v152_v6 = vpop.f32.mrf.mxu0 }
 0x3ac   :  { %v153_v8 = vadd.f32 %v152_v6, %v91_v5  ;;  %v34_v6 = vld [vmem:[%s2020_s0 + $0x30] sm:$0xff] }
 0x3ae   :  { %v185_v9 = vmax.f32 %v153_v8, 0.0  ;;  %v50_v8 = vld [vmem:[#allocation2 + $0x30] sm:$0xff] }
 0x3b0   :  { %v198_v10 = vpack.c.bf16 %v185_v9, %v184_v7  ;;  %v35_v7 = vld [vmem:[%s2020_s0 + $0x38] sm:$0xff] }
 0x3b1   :  { %v51_v9 = vld [vmem:[#allocation2 + $0x38] sm:$0xff] }
 0x3b2   :  { %1479 = vmatmul.msk.bf16.gmra.mxu1 %vm226_vm3, %v198_v10  ;;  %v66_v10 = vmul.f32 %v50_v8, %v34_v6 }
 0x3de   :  { %v496_v34 = vpop.permute.xlu2 %495 }
 0x3df   :  { %v500_v37 = vmul.f32 %v496_v34, %v485_v36 }
 0x3e1   :  { %505 = vrot.lane.b32.xlu1 %v500_v37, %s1689_s20 }
 0x3ee   :  { %v494_v46 = vpop.permute.xlu1 %493 }
 0x3ef   :  { %v499_v48 = vmul.f32 %v494_v46, %v470_v47 }
 0x3f1   :  { %503 = vrot.lane.b32.xlu0 %v499_v48, %s1689_s20 }
 0x42f   :  { %v270_v26 = vpop.f32.mrf.mxu1 }
 0x430   :  { %v271_v28 = vadd.f32 %v270_v26, %v214_v27 }
 0x437   :  { %v272_v32 = vpop.f32.mrf.mxu1 }
 0x438   :  { %v273_v33 = vadd.f32 %v272_v32, %v215_v31  ;;  %v93_v32 = vld [vmem:[#allocation2 + $0xb8] sm:$0xff] }
 0x453   :  { %v506_v57 = vpop.permute.xlu1 %505 }
 0x454   :  { %v1798_v58 = vadd.f32 %v506_v57, %v490_v56 }
 0x456   :  { %1553 = vtanh.f32 %v1798_v58 }
 0x45c   :  { %v1554_v59 = vpop.eup %1553 }
 0x45d   :  { %517 = vrot.lane.b32.xlu0 %v1554_v59, %s1688_s1 }
 0x463   :  { %v504_v61 = vpop.permute.xlu0 %503 }
 0x464   :  { %v1803_v62 = vadd.f32 %v504_v61, %v489_v60 }
 0x466   :  { %1555 = vtanh.f32 %v1803_v62 }
 0x46c   :  { %v1556_v63 = vpop.eup %1555 }
 0x46d   :  { %515 = vrot.lane.b32.xlu2 %v1556_v63, %s1688_s1 }
 0x4c7   :  { %v516_v39 = vpop.permute.xlu2 %515 }
 0x4c8   :  { %v521_v0 = vmul.f32 %v516_v39, %v470_v47 }
 0x4ca   :  { %525 = vrot.lane.b32.xlu1 %v521_v0, %s1689_s20  ;;  %531 = vrot.lane.b32.xlu0 %v521_v0, %s1688_s1 }
 0x4cf   :  { %v518_v1 = vpop.permute.xlu0 %517 }
 0x4d0   :  { %v522_v2 = vmul.f32 %v518_v1, %v485_v36 }
 0x4d2   :  { %533 = vrot.lane.b32.xlu1 %v522_v2, %s1688_s1  ;;  %527 = vrot.lane.b32.xlu2 %v522_v2, %s1689_s20 }
 0x52c   :  { %v528_v16 = vpop.permute.xlu2 %527 }
 0x53c   :  { %v526_v11 = vpop.permute.xlu1 %525  ;;  %v532_v12 = vpop.permute.xlu0 %531 }
 0x53d   :  { %v537_v14 = vsel %vm226_vm3, %v526_v11, %v532_v12  ;;  %v67_v11 = vmul.f32 %v51_v9, %v35_v7 }
 0x53e   :  { %v539_v20 = vmul.f32 %v537_v14, %v1731_v22 }
 0x53f   :  { %v79_v12 = vpack.c.bf16 %v67_v11, %v66_v10 }
 0x541   :  { %1472 = vmatmul.msk.bf16.gmra.mxu0 %vm102_vm1, %v79_v12 }
 0x544   :  { %v534_v17 = vpop.permute.xlu1 %533 }
 0x545   :  { %v538_v19 = vsel %vm226_vm3, %v528_v16, %v534_v17 }
 0x546   :  { %v540_v24 = vmul.f32 %v538_v19, %v1733_v23 }
 0x548   :  { %v541_v25 = vpack.c.bf16 %v540_v24, %v539_v20 }
 0x54a   :  { %1491 = vmatmul.msk.bf16.vlgmr.msrb.gmra.mxu2 %vm317_vm2, %v541_v25 }
 0x54b   :  { %997 = vmatpush.bf16.msrb.mxu2 %v1716_v13 }
 0x54f   :  { %998 = vmatpush.bf16.msrb.mxu2 %v1719_v15 }
 0x553   :  { %999 = vmatpush.bf16.msrb.mxu2 %v1724_v18 }
 0x557   :  { %1000 = vmatpush.bf16.msrb.mxu2 %v1729_v21 }
 0x5cd   :  { %v554_v29 = vpop.f32.mrf.mxu2 }
 0x5ce   :  { %v559_v30 = vadd.f32 %v554_v29, %v271_v28 }
 0x5d0   :  { %1557 = vtanh.f32 %v559_v30  ;;  %v1492_v40 = vmul.f32 -1.442695, %v559_v30  ;;  %v92_v30 = vld [vmem:[#allocation2 + $0xb0] sm:$0xff] }
 0x5d5   :  { %v556_v34 = vpop.f32.mrf.mxu2 }
 0x5d6   :  { %v1558_v36 = vpop.eup %1557  ;;  %v560_v37 = vadd.f32 %v556_v34, %v273_v33 }
 0x5d7   :  { %605 = vrot.lane.b32.xlu2 %v1558_v36, %s1688_s1 }
 0x5d8   :  { %1559 = vtanh.f32 %v560_v37  ;;  %v1493_v46 = vmul.f32 -1.442695, %v560_v37 }
 0x5d9   :  { %1561 = vpow2.f32 %v1492_v40 }
 0x5de   :  { %v1560_v38 = vpop.eup %1559 }
 0x5df   :  { %607 = vrot.lane.b32.xlu0 %v1560_v38, %s1688_s1  ;;  %v1562_v41 = vpop.eup %1561 }
 0x5e0   :  { %v567_v42 = vadd.f32 1.0, %v1562_v41 }
 0x5e2   :  { %1563 = vrcp.f32 %v567_v42  ;;  %v580_v49 = vand.u32 2147483648, %v567_v42  ;;  %vm574_vm9 = vweird.f32 %v567_v42  ;;  %v578_v50 = vand.u32 2147483647, %v567_v42 }
 0x5e3   :  { %1565 = vpow2.f32 %v1493_v46 }
 0x5e4   :  { %v581_v53 = vor.u32 1.1754944e-38, %v580_v49  ;;  %vm579_vm11 = vcmp.eq.f32.partialorder %v578_v50, 8.507059e+37  ;;  %v216_v50 = vld [vmem:[#allocation2 + $0x130] sm:$0xff] }
 0x5e8   :  { %v1564_v43 = vpop.eup %1563 }
 0x5e9   :  { %v570_v44 = vmul.f32 %v1564_v43, %v567_v42  ;;  %vm575_vm8 = vweird.f32 %v1564_v43  ;;  %v1566_v51 = vpop.eup %1565 }
 0x5ea   :  { %vm576_vm10 = vmor %vm574_vm9, %vm575_vm8  ;;  %v568_v54 = vadd.f32 1.0, %v1566_v51 }
 0x5eb   :  { %v571_v45 = vsub.f32 1.0, %v570_v44 }
 0x5ec   :  { %1567 = vrcp.f32 %v568_v54  ;;  %v595_v0 = vand.u32 2147483648, %v568_v54  ;;  %vm589_vm13 = vweird.f32 %v568_v54  ;;  %v593_v1 = vand.u32 2147483647, %v568_v54 }
 0x5ed   :  { %v572_v47 = vmul.f32 %v1564_v43, %v571_v45 }
 0x5ee   :  { %v596_v35 = vor.u32 1.1754944e-38, %v595_v0  ;;  %vm594_vm15 = vcmp.eq.f32.partialorder %v593_v1, 8.507059e+37 }
 0x5ef   :  { %v573_v48 = vadd.f32 %v1564_v43, %v572_v47 }
 0x5f1   :  { %v577_v52 = vsel %vm576_vm10, %v1564_v43, %v573_v48 }
 0x5f2   :  { %v582_v56 = vsel %vm579_vm11, %v581_v53, %v577_v52  ;;  %v1568_v59 = vpop.eup %1567 }
 0x5f3   :  { %v585_v60 = vmul.f32 %v1568_v59, %v568_v54  ;;  %vm590_vm12 = vweird.f32 %v1568_v59  ;;  %v601_v14 = vmul.f32 %v582_v56, %v1803_v62  ;;  %v217_v54 = vld [vmem:[#allocation2 + $0x138] sm:$0xff] }
 0x5f4   :  { %vm591_vm14 = vmor %vm589_vm13, %vm590_vm12 }
 0x5f5   :  { %v586_v61 = vsub.f32 1.0, %v585_v60 }
 0x5f7   :  { %v587_v63 = vmul.f32 %v1568_v59, %v586_v61 }
 0x5f9   :  { %v588_v39 = vadd.f32 %v1568_v59, %v587_v63 }
 0x5fb   :  { %v592_v2 = vsel %vm591_vm14, %v1568_v59, %v588_v39 }
 0x5fc   :  { %v597_v4 = vsel %vm594_vm15, %v596_v35, %v592_v2 }
 0x5fd   :  { %v602_v19 = vmul.f32 %v597_v4, %v1798_v58  ;;  %v155_v58 = vpop.f32.mrf.mxu0 }
 0x5fe   :  { %v156_v31 = vadd.f32 %v155_v58, %v92_v30 }
 0x600   :  { %v186_v34 = vmax.f32 %v156_v31, 0.0 }
 0x605   :  { %v157_v33 = vpop.f32.mrf.mxu0 }
 0x606   :  { %v158_v36 = vadd.f32 %v157_v33, %v93_v32  ;;  %v36_v33 = vld [vmem:[%s2020_s0 + $0x40] sm:$0xff] }
 0x608   :  { %v187_v37 = vmax.f32 %v158_v36, 0.0  ;;  %v52_v36 = vld [vmem:[#allocation2 + $0x40] sm:$0xff] }
 0x60a   :  { %v199_v38 = vpack.c.bf16 %v187_v37, %v186_v34  ;;  %v37_v34 = vld [vmem:[%s2020_s0 + $0x48] sm:$0xff] }
 0x60b   :  { %v53_v37 = vld [vmem:[#allocation2 + $0x48] sm:$0xff] }
 0x60c   :  { %1480 = vmatmul.msk.bf16.gmra.mxu1 %vm226_vm3, %v199_v38  ;;  %v68_v38 = vmul.f32 %v52_v36, %v36_v33 }
 0x631   :  { %v606_v55 = vpop.permute.xlu2 %605 }
 0x632   :  { %v611_v57 = vmul.f32 %v606_v55, %v582_v56 }
 0x634   :  { %615 = vrot.lane.b32.xlu1 %v611_v57, %s1689_s20 }
 0x651   :  { %v608_v3 = vpop.permute.xlu0 %607 }
 0x652   :  { %v612_v5 = vmul.f32 %v608_v3, %v597_v4 }
 0x654   :  { %617 = vrot.lane.b32.xlu2 %v612_v5, %s1689_s20 }
 0x689   :  { %v275_v49 = vpop.f32.mrf.mxu1 }
 0x68a   :  { %v276_v51 = vadd.f32 %v275_v49, %v216_v50  ;;  %v94_v49 = vld [vmem:[#allocation2 + $0xc0] sm:$0xff] }
 0x691   :  { %v277_v55 = vpop.f32.mrf.mxu1 }
 0x6a6   :  { %v616_v16 = vpop.permute.xlu1 %615 }
 0x6a7   :  { %v1833_v17 = vadd.f32 %v616_v16, %v601_v14 }
 0x6a9   :  { %1569 = vtanh.f32 %v1833_v17 }
 0x6ae   :  { %v618_v20 = vpop.permute.xlu2 %617 }
 0x6af   :  { %v1570_v24 = vpop.eup %1569  ;;  %v1837_v25 = vadd.f32 %v618_v20, %v602_v19 }
 0x6b0   :  { %627 = vrot.lane.b32.xlu0 %v1570_v24, %s1688_s1 }
 0x6b1   :  { %1571 = vtanh.f32 %v1837_v25 }
 0x6b7   :  { %v1572_v26 = vpop.eup %1571 }
 0x6b8   :  { %629 = vrot.lane.b32.xlu1 %v1572_v26, %s1688_s1 }
 0x722   :  { %v628_v27 = vpop.permute.xlu0 %627 }
 0x723   :  { %v633_v62 = vmul.f32 %v628_v27, %v582_v56  ;;  %v278_v56 = vadd.f32 %v277_v55, %v217_v54 }
 0x725   :  { %637 = vrot.lane.b32.xlu2 %v633_v62, %s1689_s20  ;;  %643 = vrot.lane.b32.xlu1 %v633_v62, %s1688_s1 }
 0x72a   :  { %v630_v28 = vpop.permute.xlu1 %629 }
 0x72b   :  { %v634_v29 = vmul.f32 %v630_v28, %v597_v4 }
 0x72d   :  { %645 = vrot.lane.b32.xlu2 %v634_v29, %s1688_s1  ;;  %639 = vrot.lane.b32.xlu0 %v634_v29, %s1689_s20 }
 0x77f   :  { %v638_v40 = vpop.permute.xlu2 %637 }
 0x787   :  { %v646_v43 = vpop.permute.xlu2 %645 }
 0x797   :  { %v644_v41 = vpop.permute.xlu1 %643 }
 0x798   :  { %v649_v42 = vsel %vm226_vm3, %v638_v40, %v644_v41 }
 0x799   :  { %v651_v46 = vmul.f32 %v649_v42, %v1731_v22 }
 0x79f   :  { %v640_v44 = vpop.permute.xlu0 %639 }
 0x7a0   :  { %v650_v45 = vsel %vm226_vm3, %v640_v44, %v646_v43 }
 0x7a1   :  { %v652_v47 = vmul.f32 %v650_v45, %v1733_v23 }
 0x7a3   :  { %v653_v48 = vpack.c.bf16 %v652_v47, %v651_v46 }
 0x7a5   :  { %1494 = vmatmul.msk.bf16.vlgmr.msrb.gmra.mxu3 %vm317_vm2, %v653_v48 }
 0x7a6   :  { %1109 = vmatpush.bf16.msrb.mxu3 %v1716_v13 }
 0x7aa   :  { %1110 = vmatpush.bf16.msrb.mxu3 %v1719_v15 }
 0x7ae   :  { %1111 = vmatpush.bf16.msrb.mxu3 %v1724_v18 }
 0x7b2   :  { %1112 = vmatpush.bf16.msrb.mxu3 %v1729_v21 }
 0x828   :  { %v666_v52 = vpop.f32.mrf.mxu3 }
 0x829   :  { %v671_v53 = vadd.f32 %v666_v52, %v276_v51  ;;  %v95_v51 = vld [vmem:[#allocation2 + $0xc8] sm:$0xff] }
 0x82b   :  { %1573 = vtanh.f32 %v671_v53  ;;  %v1495_v15 = vmul.f32 -1.442695, %v671_v53 }
 0x830   :  { %v668_v57 = vpop.f32.mrf.mxu3 }
 0x831   :  { %v1574_v59 = vpop.eup %1573  ;;  %v672_v60 = vadd.f32 %v668_v57, %v278_v56 }
 0x832   :  { %717 = vrot.lane.b32.xlu0 %v1574_v59, %s1688_s1 }
 0x833   :  { %1575 = vtanh.f32 %v672_v60  ;;  %v1496_v18 = vmul.f32 -1.442695, %v672_v60 }
 0x834   :  { %1577 = vpow2.f32 %v1495_v15 }
 0x835   :  { %1579 = vpow2.f32 %v1496_v18 }
 0x839   :  { %v1576_v13 = vpop.eup %1575 }
 0x83a   :  { %719 = vrot.lane.b32.xlu1 %v1576_v13, %s1688_s1  ;;  %v1578_v21 = vpop.eup %1577 }
 0x83b   :  { %v679_v61 = vadd.f32 1.0, %v1578_v21  ;;  %v1580_v63 = vpop.eup %1579 }
 0x83c   :  { %v680_v39 = vadd.f32 1.0, %v1580_v63 }
 0x83d   :  { %1581 = vrcp.f32 %v679_v61  ;;  %v692_v7 = vand.u32 2147483648, %v679_v61  ;;  %vm686_vm5 = vweird.f32 %v679_v61  ;;  %v690_v8 = vand.u32 2147483647, %v679_v61 }
 0x83e   :  { %1583 = vrcp.f32 %v680_v39  ;;  %v707_v20 = vand.u32 2147483648, %v680_v39  ;;  %vm701_vm9 = vweird.f32 %v680_v39  ;;  %v705_v24 = vand.u32 2147483647, %v680_v39 }
 0x83f   :  { %v693_v11 = vor.u32 1.1754944e-38, %v692_v7  ;;  %vm691_vm7 = vcmp.eq.f32.partialorder %v690_v8, 8.507059e+37 }
 0x840   :  { %v708_v27 = vor.u32 1.1754944e-38, %v707_v20  ;;  %vm706_vm11 = vcmp.eq.f32.partialorder %v705_v24, 8.507059e+37 }
 0x843   :  { %v1582_v0 = vpop.eup %1581 }
 0x844   :  { %v682_v1 = vmul.f32 %v1582_v0, %v679_v61  ;;  %v1584_v35 = vpop.eup %1583  ;;  %vm687_vm4 = vweird.f32 %v1582_v0 }
 0x845   :  { %v697_v4 = vmul.f32 %v1584_v35, %v680_v39  ;;  %vm688_vm6 = vmor %vm686_vm5, %vm687_vm4  ;;  %vm702_vm8 = vweird.f32 %v1584_v35 }
 0x846   :  { %v683_v2 = vsub.f32 1.0, %v682_v1  ;;  %vm703_vm10 = vmor %vm701_vm9, %vm702_vm8 }
 0x847   :  { %v698_v6 = vsub.f32 1.0, %v697_v4 }
 0x848   :  { %v684_v3 = vmul.f32 %v1582_v0, %v683_v2 }
 0x849   :  { %v699_v10 = vmul.f32 %v1584_v35, %v698_v6 }
 0x84a   :  { %v685_v5 = vadd.f32 %v1582_v0, %v684_v3  ;;  %v219_v3 = vld [vmem:[#allocation2 + $0x148] sm:$0xff] }
 0x84b   :  { %v700_v19 = vadd.f32 %v1584_v35, %v699_v10 }
 0x84c   :  { %v689_v9 = vsel %vm688_vm6, %v1582_v0, %v685_v5  ;;  %v218_v0 = vld [vmem:[#allocation2 + $0x140] sm:$0xff] }
 0x84d   :  { %v694_v14 = vsel %vm691_vm7, %v693_v11, %v689_v9  ;;  %v704_v26 = vsel %vm703_vm10, %v1584_v35, %v700_v19 }
 0x84e   :  { %v709_v28 = vsel %vm706_vm11, %v708_v27, %v704_v26  ;;  %v713_v58 = vmul.f32 %v694_v14, %v1833_v17  ;;  %v69_v17 = vmul.f32 %v53_v37, %v37_v34 }
 0x84f   :  { %v714_v41 = vmul.f32 %v709_v28, %v1837_v25 }
 0x850   :  { %v80_v40 = vpack.c.bf16 %v69_v17, %v68_v38 }
 0x852   :  { %1473 = vmatmul.msk.bf16.gmra.mxu0 %vm102_vm1, %v80_v40 }
 0x8a4   :  { %v718_v12 = vpop.permute.xlu0 %717 }
 0x8a5   :  { %v723_v16 = vmul.f32 %v718_v12, %v694_v14 }
 0x8a7   :  { %727 = vrot.lane.b32.xlu2 %v723_v16, %s1689_s20 }
 0x8ac   :  { %v720_v62 = vpop.permute.xlu1 %719 }
 0x8ad   :  { %v724_v29 = vmul.f32 %v720_v62, %v709_v28 }
 0x8af   :  { %729 = vrot.lane.b32.xlu0 %v724_v29, %s1689_s20 }
 0x8cf   :  { %v160_v25 = vpop.f32.mrf.mxu0 }
 0x8d0   :  { %v161_v50 = vadd.f32 %v160_v25, %v94_v49  ;;  %v54_v25 = vld [vmem:[#allocation2 + $0x50] sm:$0xff]  ;;  %v55_v49 = vld [vmem:[#allocation2 + $0x58] sm:$0xff] }
 0x8d2   :  { %v188_v53 = vmax.f32 %v161_v50, 0.0 }
 0x8d7   :  { %v162_v52 = vpop.f32.mrf.mxu0 }
 0x8d8   :  { %v163_v54 = vadd.f32 %v162_v52, %v95_v51 }
 0x8da   :  { %v189_v55 = vmax.f32 %v163_v54, 0.0 }
 0x8dc   :  { %v200_v56 = vpack.c.bf16 %v189_v55, %v188_v53 }
 0x8de   :  { %1481 = vmatmul.msk.bf16.gmra.mxu1 %vm226_vm3, %v200_v56 }
 0x901   :  { %v728_v30 = vpop.permute.xlu2 %727 }
 0x902   :  { %v1861_v31 = vadd.f32 %v728_v30, %v713_v58 }
 0x904   :  { %1585 = vtanh.f32 %v1861_v31 }
 0x90a   :  { %v1586_v32 = vpop.eup %1585 }
 0x90b   :  { %739 = vrot.lane.b32.xlu1 %v1586_v32, %s1688_s1 }
 0x921   :  { %v730_v42 = vpop.permute.xlu0 %729 }
 0x922   :  { %v1873_v43 = vadd.f32 %v730_v42, %v714_v41 }
 0x924   :  { %1587 = vtanh.f32 %v1873_v43 }
 0x92a   :  { %v1588_v44 = vpop.eup %1587 }
 0x92b   :  { %741 = vrot.lane.b32.xlu2 %v1588_v44, %s1688_s1 }
 0x95b   :  { %v280_v39 = vpop.f32.mrf.mxu1 }
 0x95c   :  { %v281_v1 = vadd.f32 %v280_v39, %v218_v0  ;;  %v97_v39 = vld [vmem:[#allocation2 + $0xd8] sm:$0xff] }
 0x963   :  { %v282_v4 = vpop.f32.mrf.mxu1 }
 0x964   :  { %v283_v5 = vadd.f32 %v282_v4, %v219_v3 }
 0x97d   :  { %v740_v45 = vpop.permute.xlu1 %739 }
 0x97e   :  { %v745_v46 = vmul.f32 %v740_v45, %v694_v14 }
 0x980   :  { %749 = vrot.lane.b32.xlu0 %v745_v46, %s1689_s20  ;;  %755 = vrot.lane.b32.xlu2 %v745_v46, %s1688_s1 }
 0x985   :  { %v742_v47 = vpop.permute.xlu2 %741 }
 0x986   :  { %v746_v48 = vmul.f32 %v742_v47, %v709_v28  ;;  %v38_v47 = vld [vmem:[%s2020_s0 + $0x50] sm:$0xff] }
 0x987   :  { %v70_v50 = vmul.f32 %v54_v25, %v38_v47 }
 0x988   :  { %757 = vrot.lane.b32.xlu0 %v746_v48, %s1688_s1  ;;  %751 = vrot.lane.b32.xlu1 %v746_v48, %s1689_s20  ;;  %v39_v48 = vld [vmem:[%s2020_s0 + $0x58] sm:$0xff] }
 0x989   :  { %v71_v51 = vmul.f32 %v55_v49, %v39_v48 }
 0x98b   :  { %v81_v52 = vpack.c.bf16 %v71_v51, %v70_v50 }
 0x98d   :  { %1474 = vmatmul.msk.bf16.gmra.mxu0 %vm102_vm1, %v81_v52 }
 0x9da   :  { %v756_v59 = vpop.permute.xlu2 %755 }
 0x9f2   :  { %v750_v57 = vpop.permute.xlu0 %749 }
 0x9f3   :  { %v761_v60 = vsel %vm226_vm3, %v750_v57, %v756_v59 }
 0x9f4   :  { %v763_v21 = vmul.f32 %v761_v60, %v1731_v22 }
 0x9fa   :  { %v758_v13 = vpop.permute.xlu0 %757  ;;  %v752_v15 = vpop.permute.xlu1 %751 }
 0x9fb   :  { %v762_v18 = vsel %vm226_vm3, %v752_v15, %v758_v13 }
 0x9fc   :  { %v764_v61 = vmul.f32 %v762_v18, %v1733_v23 }
 0x9fe   :  { %v765_v63 = vpack.c.bf16 %v764_v61, %v763_v21  ;;  %v96_v61 = vld [vmem:[#allocation2 + $0xd0] sm:$0xff] }
 0xa00   :  { %1497 = vmatmul.msk.bf16.vlgmr.msra.gmra.mxu2 %vm317_vm2, %v765_v63 }
 0xa83   :  { %v778_v2 = vpop.f32.mrf.mxu2 }
 0xa84   :  { %v783_v35 = vadd.f32 %v778_v2, %v281_v1 }
 0xa86   :  { %1589 = vtanh.f32 %v783_v35  ;;  %v1498_v11 = vmul.f32 -1.442695, %v783_v35 }
 0xa8b   :  { %v780_v6 = vpop.f32.mrf.mxu2 }
 0xa8c   :  { %v1590_v7 = vpop.eup %1589  ;;  %v784_v8 = vadd.f32 %v780_v6, %v283_v5 }
 0xa8d   :  { %829 = vrot.lane.b32.xlu1 %v1590_v7, %s1688_s1 }
 0xa8e   :  { %1591 = vtanh.f32 %v784_v8  ;;  %v1499_v23 = vmul.f32 -1.442695, %v784_v8 }
 0xa90   :  { %1593 = vpow2.f32 %v1499_v23  ;;  %v1915_v23 = vld [vmem:[#allocation2 + $0x180] sm:$0xff] }
 0xa94   :  { %v1592_v22 = vpop.eup %1591 }
 0xa95   :  { %831 = vrot.lane.b32.xlu2 %v1592_v22, %s1688_s1 }
 0xa96   :  { %v1594_v9 = vpop.eup %1593 }
 0xa97   :  { %v792_v10 = vadd.f32 1.0, %v1594_v9 }
 0xa99   :  { %1595 = vrcp.f32 %v792_v10  ;;  %v819_v62 = vand.u32 2147483648, %v792_v10  ;;  %vm813_vm13 = vweird.f32 %v792_v10  ;;  %v817_v28 = vand.u32 2147483647, %v792_v10 }
 0xa9a   :  { %1597 = vpow2.f32 %v1498_v11 }
 0xa9b   :  { %v820_v30 = vor.u32 1.1754944e-38, %v819_v62  ;;  %vm818_vm15 = vcmp.eq.f32.partialorder %v817_v28, 8.507059e+37 }
 0xa9f   :  { %v1596_v12 = vpop.eup %1595 }
 0xaa0   :  { %v1598_v14 = vpop.eup %1597  ;;  %v809_v16 = vmul.f32 %v1596_v12, %v792_v10  ;;  %vm814_vm12 = vweird.f32 %v1596_v12  ;;  %v1918_v10 = vld [vmem:[#allocation2 + $0x188] sm:$0xff] }
 0xaa1   :  { %v791_v19 = vadd.f32 1.0, %v1598_v14  ;;  %vm815_vm14 = vmor %vm813_vm13, %vm814_vm12 }
 0xaa2   :  { %v810_v20 = vsub.f32 1.0, %v809_v16  ;;  %v220_v16 = vld [vmem:[#allocation2 + $0x150] sm:$0xff] }
 0xaa3   :  { %1599 = vrcp.f32 %v791_v19  ;;  %v804_v17 = vand.u32 2147483648, %v791_v19  ;;  %vm798_vm5 = vweird.f32 %v791_v19  ;;  %v802_v40 = vand.u32 2147483647, %v791_v19 }
 0xaa4   :  { %v811_v24 = vmul.f32 %v1596_v12, %v810_v20 }
 0xaa5   :  { %v805_v42 = vor.u32 1.1754944e-38, %v804_v17  ;;  %vm803_vm7 = vcmp.eq.f32.partialorder %v802_v40, 8.507059e+37 }
 0xaa6   :  { %v812_v26 = vadd.f32 %v1596_v12, %v811_v24 }
 0xaa8   :  { %v816_v29 = vsel %vm815_vm14, %v1596_v12, %v812_v26  ;;  %v221_v26 = vld [vmem:[#allocation2 + $0x158] sm:$0xff] }
 0xaa9   :  { %v1600_v27 = vpop.eup %1599  ;;  %v821_v33 = vsel %vm818_vm15, %v820_v30, %v816_v29 }
 0xaaa   :  { %v794_v58 = vmul.f32 %v1600_v27, %v791_v19  ;;  %vm799_vm4 = vweird.f32 %v1600_v27  ;;  %v826_v53 = vmul.f32 %v821_v33, %v1873_v43 }
 0xaab   :  { %vm800_vm6 = vmor %vm798_vm5, %vm799_vm4 }
 0xaac   :  { %v795_v36 = vsub.f32 1.0, %v794_v58 }
 0xaae   :  { %v796_v37 = vmul.f32 %v1600_v27, %v795_v36 }
 0xab0   :  { %v797_v38 = vadd.f32 %v1600_v27, %v796_v37 }
 0xab2   :  { %v801_v41 = vsel %vm800_vm6, %v1600_v27, %v797_v38 }
 0xab3   :  { %v806_v45 = vsel %vm803_vm7, %v805_v42, %v801_v41 }
 0xab4   :  { %v825_v57 = vmul.f32 %v806_v45, %v1861_v31  ;;  %v165_v31 = vpop.f32.mrf.mxu0 }
 0xab5   :  { %v166_v63 = vadd.f32 %v165_v31, %v96_v61  ;;  %v40_v31 = vld [vmem:[%s2020_s0 + $0x60] sm:$0xff]  ;;  %v41_v61 = vld [vmem:[%s2020_s0 + $0x68] sm:$0xff] }
 0xab7   :  { %v190_v1 = vmax.f32 %v166_v63, 0.0  ;;  %v56_v63 = vld [vmem:[#allocation2 + $0x60] sm:$0xff] }
 0xabc   :  { %v167_v0 = vpop.f32.mrf.mxu0 }
 0xabd   :  { %v168_v2 = vadd.f32 %v167_v0, %v97_v39  ;;  %v57_v39 = vld [vmem:[#allocation2 + $0x68] sm:$0xff]  ;;  %v72_v0 = vmul.f32 %v56_v63, %v40_v31 }
 0xabf   :  { %v191_v35 = vmax.f32 %v168_v2, 0.0 }
 0xac1   :  { %v201_v3 = vpack.c.bf16 %v191_v35, %v190_v1  ;;  %v73_v1 = vmul.f32 %v57_v39, %v41_v61 }
 0xac3   :  { %1482 = vmatmul.msk.bf16.gmra.mxu1 %vm226_vm3, %v201_v3  ;;  %v82_v2 = vpack.c.bf16 %v73_v1, %v72_v0 }
 0xac5   :  { %1475 = vmatmul.msk.bf16.gmra.mxu0 %vm102_vm1, %v82_v2 }
 0xaef   :  { %v832_v32 = vpop.permute.xlu2 %831 }
 0xaf0   :  { %v836_v34 = vmul.f32 %v832_v32, %v821_v33 }
 0xaf2   :  { %841 = vrot.lane.b32.xlu1 %v836_v34, %s1689_s20 }
 0xaff   :  { %v830_v44 = vpop.permute.xlu1 %829 }
 0xb00   :  { %v835_v46 = vmul.f32 %v830_v44, %v806_v45 }
 0xb02   :  { %839 = vrot.lane.b32.xlu0 %v835_v46, %s1689_s20 }
 0xb40   :  { %v285_v14 = vpop.f32.mrf.mxu1 }
 0xb41   :  { %v286_v19 = vadd.f32 %v285_v14, %v220_v16  ;;  %v98_v14 = vld [vmem:[#allocation2 + $0xe0] sm:$0xff] }
 0xb48   :  { %v287_v27 = vpop.f32.mrf.mxu1 }
 0xb49   :  { %v288_v62 = vadd.f32 %v287_v27, %v221_v26 }
 0xb64   :  { %v842_v54 = vpop.permute.xlu1 %841 }
 0xb65   :  { %v1899_v55 = vadd.f32 %v842_v54, %v826_v53 }
 0xb67   :  { %1601 = vtanh.f32 %v1899_v55 }
 0xb6d   :  { %v1602_v56 = vpop.eup %1601 }
 0xb6e   :  { %853 = vrot.lane.b32.xlu0 %v1602_v56, %s1688_s1 }
 0xb74   :  { %v840_v59 = vpop.permute.xlu0 %839 }
 0xb75   :  { %v1904_v60 = vadd.f32 %v840_v59, %v825_v57 }
 0xb77   :  { %1603 = vtanh.f32 %v1904_v60 }
 0xb7d   :  { %v1604_v13 = vpop.eup %1603 }
 0xb7e   :  { %851 = vrot.lane.b32.xlu2 %v1604_v13, %s1688_s1 }
 0xbd8   :  { %v852_v43 = vpop.permute.xlu2 %851 }
 0xbd9   :  { %v857_v15 = vmul.f32 %v852_v43, %v806_v45 }
 0xbdb   :  { %861 = vrot.lane.b32.xlu1 %v857_v15, %s1689_s20  ;;  %867 = vrot.lane.b32.xlu0 %v857_v15, %s1688_s1 }
 0xbe0   :  { %v854_v18 = vpop.permute.xlu0 %853 }
 0xbe1   :  { %v858_v21 = vmul.f32 %v854_v18, %v821_v33 }
 0xbe3   :  { %869 = vrot.lane.b32.xlu1 %v858_v21, %s1688_s1  ;;  %863 = vrot.lane.b32.xlu2 %v858_v21, %s1689_s20 }
 0xc3d   :  { %v864_v7 = vpop.permute.xlu2 %863 }
 0xc4d   :  { %v862_v4 = vpop.permute.xlu1 %861  ;;  %v868_v5 = vpop.permute.xlu0 %867 }
 0xc4e   :  { %v873_v6 = vsel %vm226_vm3, %v862_v4, %v868_v5 }
 0xc4f   :  { %v875_v9 = vmul.f32 %v1915_v23, %v873_v6 }
 0xc55   :  { %v870_v8 = vpop.permute.xlu1 %869 }
 0xc56   :  { %v874_v22 = vsel %vm226_vm3, %v864_v7, %v870_v8 }
 0xc57   :  { %v876_v11 = vmul.f32 %v1918_v10, %v874_v22 }
 0xc59   :  { %v877_v12 = vpack.c.bf16 %v876_v11, %v875_v9 }
 0xc5b   :  { %1500 = vmatmul.msk.bf16.vlgmr.msra.gmra.mxu3 %vm317_vm2, %v877_v12 }
 0xcde   :  { %v890_v20 = vpop.f32.mrf.mxu3 }
 0xcdf   :  { %v895_v24 = vadd.f32 %v890_v20, %v286_v19  ;;  %v99_v19 = vld [vmem:[#allocation2 + $0xe8] sm:$0xff] }
 0xce1   :  { %1605 = vtanh.f32 %v895_v24  ;;  %v1501_v32 = vmul.f32 -1.442695, %v895_v24 }
 0xce6   :  { %v892_v28 = vpop.f32.mrf.mxu3 }
 0xce7   :  { %v1606_v29 = vpop.eup %1605  ;;  %v896_v58 = vadd.f32 %v892_v28, %v288_v62 }
 0xce8   :  { %941 = vrot.lane.b32.xlu2 %v1606_v29, %s1688_s1 }
 0xce9   :  { %1607 = vtanh.f32 %v896_v58  ;;  %v1502_v17 = vmul.f32 -1.442695, %v896_v58 }
 0xcea   :  { %1609 = vpow2.f32 %v1501_v32 }
 0xcef   :  { %v1608_v30 = vpop.eup %1607 }
 0xcf0   :  { %943 = vrot.lane.b32.xlu0 %v1608_v30, %s1688_s1  ;;  %v1610_v33 = vpop.eup %1609 }
 0xcf1   :  { %v903_v34 = vadd.f32 1.0, %v1610_v33 }
 0xcf3   :  { %1611 = vrcp.f32 %v903_v34  ;;  %v916_v42 = vand.u32 2147483648, %v903_v34  ;;  %vm910_vm9 = vweird.f32 %v903_v34  ;;  %v914_v44 = vand.u32 2147483647, %v903_v34 }
 0xcf4   :  { %1613 = vpow2.f32 %v1502_v17  ;;  %v222_v17 = vld [vmem:[#allocation2 + $0x160] sm:$0xff] }
 0xcf5   :  { %v917_v47 = vor.u32 1.1754944e-38, %v916_v42  ;;  %vm915_vm11 = vcmp.eq.f32.partialorder %v914_v44, 8.507059e+37  ;;  %v223_v44 = vld [vmem:[#allocation2 + $0x168] sm:$0xff] }
 0xcf9   :  { %v1612_v36 = vpop.eup %1611 }
 0xcfa   :  { %v906_v37 = vmul.f32 %v1612_v36, %v903_v34  ;;  %vm911_vm8 = vweird.f32 %v1612_v36  ;;  %v1614_v45 = vpop.eup %1613 }
 0xcfb   :  { %vm912_vm10 = vmor %vm910_vm9, %vm911_vm8  ;;  %v904_v48 = vadd.f32 1.0, %v1614_v45 }
 0xcfc   :  { %v907_v38 = vsub.f32 1.0, %v906_v37 }
 0xcfd   :  { %1615 = vrcp.f32 %v904_v48  ;;  %v931_v57 = vand.u32 2147483648, %v904_v48  ;;  %vm925_vm13 = vweird.f32 %v904_v48  ;;  %v929_v59 = vand.u32 2147483647, %v904_v48 }
 0xcfe   :  { %v908_v40 = vmul.f32 %v1612_v36, %v907_v38 }
 0xcff   :  { %v932_v43 = vor.u32 1.1754944e-38, %v931_v57  ;;  %vm930_vm15 = vcmp.eq.f32.partialorder %v929_v59, 8.507059e+37 }
 0xd00   :  { %v909_v41 = vadd.f32 %v1612_v36, %v908_v40 }
 0xd02   :  { %v913_v46 = vsel %vm912_vm10, %v1612_v36, %v909_v41 }
 0xd03   :  { %v918_v49 = vsel %vm915_vm11, %v917_v47, %v913_v46  ;;  %v1616_v51 = vpop.eup %1615 }
 0xd04   :  { %v921_v52 = vmul.f32 %v1616_v51, %v904_v48  ;;  %vm926_vm12 = vweird.f32 %v1616_v51  ;;  %v937_v35 = vmul.f32 %v918_v49, %v1904_v60 }
 0xd05   :  { %vm927_vm14 = vmor %vm925_vm13, %vm926_vm12 }
 0xd06   :  { %v922_v53 = vsub.f32 1.0, %v921_v52 }
 0xd08   :  { %v923_v54 = vmul.f32 %v1616_v51, %v922_v53 }
 0xd0a   :  { %v924_v56 = vadd.f32 %v1616_v51, %v923_v54 }
 0xd0c   :  { %v928_v13 = vsel %vm927_vm14, %v1616_v51, %v924_v56 }
 0xd0d   :  { %v933_v18 = vsel %vm930_vm15, %v932_v43, %v928_v13 }
 0xd0e   :  { %v938_v5 = vmul.f32 %v933_v18, %v1899_v55  ;;  %v170_v55 = vpop.f32.mrf.mxu0 }
 0xd0f   :  { %v171_v16 = vadd.f32 %v170_v55, %v98_v14 }
 0xd11   :  { %v192_v24 = vmax.f32 %v171_v16, 0.0 }
 0xd16   :  { %v172_v20 = vpop.f32.mrf.mxu0 }
 0xd17   :  { %v173_v26 = vadd.f32 %v172_v20, %v99_v19  ;;  %v42_v20 = vld [vmem:[%s2020_s0 + $0x70] sm:$0xff] }
 0xd19   :  { %v193_v27 = vmax.f32 %v173_v26, 0.0  ;;  %v58_v26 = vld [vmem:[#allocation2 + $0x70] sm:$0xff] }
 0xd1b   :  { %v202_v62 = vpack.c.bf16 %v193_v27, %v192_v24  ;;  %v43_v24 = vld [vmem:[%s2020_s0 + $0x78] sm:$0xff]  ;;  %s1690_s0 = smov 96  }
 0xd1c   :  { %v59_v27 = vld [vmem:[#allocation2 + $0x78] sm:$0xff] }
 0xd1d   :  { %1483 = vmatmul.msk.bf16.gmra.mxu1 %vm226_vm3, %v202_v62  ;;  %v74_v62 = vmul.f32 %v58_v26, %v42_v20 }
 0xd42   :  { %v942_v25 = vpop.permute.xlu2 %941 }
 0xd43   :  { %v947_v50 = vmul.f32 %v942_v25, %v918_v49 }
 0xd45   :  { %951 = vrot.lane.b32.xlu1 %v947_v50, %s1689_s20 }
 0xd62   :  { %v944_v15 = vpop.permute.xlu0 %943 }
 0xd63   :  { %v948_v21 = vmul.f32 %v944_v15, %v933_v18 }
 0xd65   :  { %953 = vrot.lane.b32.xlu2 %v948_v21, %s1689_s20 }
 0xd9a   :  { %v290_v38 = vpop.f32.mrf.mxu1 }
 0xd9b   :  { %v291_v40 = vadd.f32 %v290_v38, %v222_v17  ;;  %v100_v38 = vld [vmem:[#allocation2 + $0xf0] sm:$0xff] }
 0xda2   :  { %v292_v45 = vpop.f32.mrf.mxu1 }
 0xda3   :  { %v293_v46 = vadd.f32 %v292_v45, %v223_v44 }
 0xdb7   :  { %v952_v3 = vpop.permute.xlu1 %951 }
 0xdb8   :  { %v1934_v4 = vadd.f32 %v952_v3, %v937_v35 }
 0xdba   :  { %1617 = vtanh.f32 %v1934_v4 }
 0xdbf   :  { %v954_v6 = vpop.permute.xlu2 %953 }
 0xdc0   :  { %v1618_v7 = vpop.eup %1617  ;;  %v1938_v8 = vadd.f32 %v954_v6, %v938_v5 }
 0xdc1   :  { %963 = vrot.lane.b32.xlu0 %v1618_v7, %s1688_s1 }
 0xdc2   :  { %1619 = vtanh.f32 %v1938_v8 }
 0xdc8   :  { %v1620_v22 = vpop.eup %1619 }
 0xdc9   :  { %965 = vrot.lane.b32.xlu1 %v1620_v22, %s1688_s1 }
 0xe33   :  { %v964_v9 = vpop.permute.xlu0 %963 }
 0xe34   :  { %v969_v60 = vmul.f32 %v964_v9, %v918_v49 }
 0xe36   :  { %973 = vrot.lane.b32.xlu2 %v969_v60, %s1689_s20  ;;  %979 = vrot.lane.b32.xlu1 %v969_v60, %s1688_s1 }
 0xe3b   :  { %v966_v11 = vpop.permute.xlu1 %965 }
 0xe3c   :  { %v970_v12 = vmul.f32 %v966_v11, %v933_v18 }
 0xe3e   :  { %981 = vrot.lane.b32.xlu2 %v970_v12, %s1688_s1  ;;  %975 = vrot.lane.b32.xlu0 %v970_v12, %s1689_s20 }
 0xe90   :  { %v974_v28 = vpop.permute.xlu2 %973 }
 0xe98   :  { %v982_v30 = vpop.permute.xlu2 %981 }
 0xea8   :  { %v980_v29 = vpop.permute.xlu1 %979 }
 0xea9   :  { %v985_v58 = vsel %vm226_vm3, %v974_v28, %v980_v29 }
 0xeaa   :  { %v987_v34 = vmul.f32 %v1915_v23, %v985_v58 }
 0xeb0   :  { %v976_v32 = vpop.permute.xlu0 %975 }
 0xeb1   :  { %v986_v33 = vsel %vm226_vm3, %v976_v32, %v982_v30 }
 0xeb2   :  { %v988_v36 = vmul.f32 %v1918_v10, %v986_v33 }
 0xeb4   :  { %v989_v37 = vpack.c.bf16 %v988_v36, %v987_v34 }
 0xeb6   :  { %1503 = vmatmul.msk.bf16.vlgmr.msrb.gmra.mxu2 %vm317_vm2, %v989_v37 }
 0xf39   :  { %v1002_v41 = vpop.f32.mrf.mxu2 }
 0xf3a   :  { %v1007_v42 = vadd.f32 %v1002_v41, %v291_v40  ;;  %v101_v40 = vld [vmem:[#allocation2 + $0xf8] sm:$0xff] }
 0xf3c   :  { %1621 = vtanh.f32 %v1007_v42  ;;  %v1504_v50 = vmul.f32 -1.442695, %v1007_v42 }
 0xf41   :  { %v1004_v47 = vpop.f32.mrf.mxu2 }
 0xf42   :  { %v1622_v48 = vpop.eup %1621  ;;  %v1008_v25 = vadd.f32 %v1004_v47, %v293_v46 }
 0xf43   :  { %1053 = vrot.lane.b32.xlu0 %v1622_v48, %s1688_s1 }
 0xf44   :  { %1623 = vtanh.f32 %v1008_v25  ;;  %v1505_v51 = vmul.f32 -1.442695, %v1008_v25 }
 0xf45   :  { %1625 = vpow2.f32 %v1504_v50 }
 0xf46   :  { %1627 = vpow2.f32 %v1505_v51 }
 0xf4a   :  { %v1624_v49 = vpop.eup %1623 }
 0xf4b   :  { %1055 = vrot.lane.b32.xlu1 %v1624_v49, %s1688_s1  ;;  %v1626_v52 = vpop.eup %1625 }
 0xf4c   :  { %v1015_v53 = vadd.f32 1.0, %v1626_v52  ;;  %v1628_v54 = vpop.eup %1627 }
 0xf4d   :  { %v1016_v56 = vadd.f32 1.0, %v1628_v54 }
 0xf4e   :  { %1629 = vrcp.f32 %v1015_v53  ;;  %v1028_v61 = vand.u32 2147483648, %v1015_v53  ;;  %vm1022_vm5 = vweird.f32 %v1015_v53  ;;  %v1026_v63 = vand.u32 2147483647, %v1015_v53 }
 0xf4f   :  { %1631 = vrcp.f32 %v1016_v56  ;;  %v1043_v6 = vand.u32 2147483648, %v1016_v56  ;;  %vm1037_vm9 = vweird.f32 %v1016_v56  ;;  %v1041_v7 = vand.u32 2147483647, %v1016_v56 }
 0xf50   :  { %v1029_v1 = vor.u32 1.1754944e-38, %v1028_v61  ;;  %vm1027_vm7 = vcmp.eq.f32.partialorder %v1026_v63, 8.507059e+37 }
 0xf51   :  { %v1044_v9 = vor.u32 1.1754944e-38, %v1043_v6  ;;  %vm1042_vm11 = vcmp.eq.f32.partialorder %v1041_v7, 8.507059e+37 }
 0xf54   :  { %v1630_v57 = vpop.eup %1629 }
 0xf55   :  { %v1018_v59 = vmul.f32 %v1630_v57, %v1015_v53  ;;  %v1632_v43 = vpop.eup %1631  ;;  %vm1023_vm4 = vweird.f32 %v1630_v57 }
 0xf56   :  { %v1033_v18 = vmul.f32 %v1632_v43, %v1016_v56  ;;  %vm1024_vm6 = vmor %vm1022_vm5, %vm1023_vm4  ;;  %vm1038_vm8 = vweird.f32 %v1632_v43 }
 0xf57   :  { %v1019_v13 = vsub.f32 1.0, %v1018_v59  ;;  %vm1039_vm10 = vmor %vm1037_vm9, %vm1038_vm8  ;;  %vm1287_vm9 = vcmask 31744  }
 0xf58   :  { %v1034_v31 = vsub.f32 1.0, %v1033_v18 }
 0xf59   :  { %v1020_v15 = vmul.f32 %v1630_v57, %v1019_v13 }
 0xf5a   :  { %v1035_v0 = vmul.f32 %v1632_v43, %v1034_v31 }
 0xf5b   :  { %v1021_v21 = vadd.f32 %v1630_v57, %v1020_v15  ;;  %v225_v15 = vld [vmem:[#allocation2 + $0x178] sm:$0xff] }
 0xf5c   :  { %v1036_v5 = vadd.f32 %v1632_v43, %v1035_v0 }
 0xf5d   :  { %v1025_v39 = vsel %vm1024_vm6, %v1630_v57, %v1021_v21  ;;  %v224_v57 = vld [vmem:[#allocation2 + $0x170] sm:$0xff] }
 0xf5e   :  { %v1030_v35 = vsel %vm1027_vm7, %v1029_v1, %v1025_v39  ;;  %v1040_v22 = vsel %vm1039_vm10, %v1632_v43, %v1036_v5 }
 0xf5f   :  { %v1045_v11 = vsel %vm1042_vm11, %v1044_v9, %v1040_v22  ;;  %v1049_v55 = vmul.f32 %v1030_v35, %v1934_v4  ;;  %v75_v4 = vmul.f32 %v59_v27, %v43_v24 }
 0xf60   :  { %v1050_v29 = vmul.f32 %v1045_v11, %v1938_v8 }
 0xf61   :  { %v83_v28 = vpack.c.bf16 %v75_v4, %v74_v62 }
 0xf63   :  { %1476 = vmatmul.msk.bf16.gmra.mxu0 %vm102_vm1, %v83_v28 }
 0xfb5   :  { %v1054_v2 = vpop.permute.xlu0 %1053 }
 0xfb6   :  { %v1059_v3 = vmul.f32 %v1054_v2, %v1030_v35 }
 0xfb8   :  { %1063 = vrot.lane.b32.xlu2 %v1059_v3, %s1689_s20 }
 0xfbd   :  { %v1056_v60 = vpop.permute.xlu1 %1055 }
 0xfbe   :  { %v1060_v12 = vmul.f32 %v1056_v60, %v1045_v11 }
 0xfc0   :  { %1065 = vrot.lane.b32.xlu0 %v1060_v12, %s1689_s20 }
 0xfe0   :  { %v175_v8 = vpop.f32.mrf.mxu0 }
 0xfe1   :  { %v176_v17 = vadd.f32 %v175_v8, %v100_v38 }
 0xfe3   :  { %v194_v42 = vmax.f32 %v176_v17, 0.0 }
 0xfe8   :  { %v177_v41 = vpop.f32.mrf.mxu0 }
 0xfe9   :  { %v178_v44 = vadd.f32 %v177_v41, %v101_v40 }
 0xfeb   :  { %v195_v45 = vmax.f32 %v178_v44, 0.0  ;;  %v1198_v44 = vld [vmem:[#allocation2 + $0x248] sm:$0xff] }
 0xfed   :  { %v203_v46 = vpack.c.bf16 %v195_v45, %v194_v42  ;;  %v1199_v45 = vld [vmem:[#allocation2 + $0x250] sm:$0xff] }
 0xfef   :  { %1484 = vmatmul.msk.bf16.gmra.mxu1 %vm226_vm3, %v203_v46  ;;  %v1196_v46 = vld [vmem:[#allocation2 + $0x238] sm:$0xff] }
0x1012   :  { %v1064_v14 = vpop.permute.xlu2 %1063 }
0x1013   :  { %v1958_v16 = vadd.f32 %v1064_v14, %v1049_v55 }
0x1015   :  { %1633 = vtanh.f32 %v1958_v16 }
0x101b   :  { %v1634_v19 = vpop.eup %1633 }
0x101c   :  { %1075 = vrot.lane.b32.xlu1 %v1634_v19, %s1688_s1 }
0x1032   :  { %v1066_v58 = vpop.permute.xlu0 %1065 }
0x1033   :  { %v1970_v30 = vadd.f32 %v1066_v58, %v1050_v29 }
0x1035   :  { %1635 = vtanh.f32 %v1970_v30 }
0x103b   :  { %v1636_v32 = vpop.eup %1635 }
0x103c   :  { %1077 = vrot.lane.b32.xlu2 %v1636_v32, %s1688_s1 }
0x106c   :  { %v295_v56 = vpop.f32.mrf.mxu1 }
0x106d   :  { %v296_v59 = vadd.f32 %v295_v56, %v224_v57  ;;  %v1227_v57 = vld [vmem:[#allocation2 + $0x1b8] sm:$0xff] }
0x1074   :  { %v297_v18 = vpop.f32.mrf.mxu1 }
0x1075   :  { %v298_v21 = vadd.f32 %v297_v18, %v225_v15 }
0x108e   :  { %v1076_v33 = vpop.permute.xlu1 %1075 }
0x108f   :  { %v1081_v34 = vmul.f32 %v1076_v33, %v1030_v35 }
0x1091   :  { %1085 = vrot.lane.b32.xlu0 %v1081_v34, %s1689_s20  ;;  %1091 = vrot.lane.b32.xlu2 %v1081_v34, %s1688_s1 }
0x1096   :  { %v1078_v36 = vpop.permute.xlu2 %1077 }
0x1097   :  { %v1082_v37 = vmul.f32 %v1078_v36, %v1045_v11 }
0x1099   :  { %1093 = vrot.lane.b32.xlu0 %v1082_v37, %s1688_s1  ;;  %1087 = vrot.lane.b32.xlu1 %v1082_v37, %s1689_s20 }
0x10eb   :  { %v1092_v48 = vpop.permute.xlu2 %1091 }
0x1103   :  { %v1086_v47 = vpop.permute.xlu0 %1085 }
0x1104   :  { %v1097_v25 = vsel %vm226_vm3, %v1086_v47, %v1092_v48  ;;  %v1201_v47 = vpack.c.bf16 %v1199_v45, %v1198_v44  ;;  %v1197_v48 = vld [vmem:[#allocation2 + $0x240] sm:$0xff] }
0x1105   :  { %v1099_v52 = vmul.f32 %v1915_v23, %v1097_v25 }
0x1106   :  { %1214 = vmatpush.bf16.msra.mxu2 %v1201_v47  ;;  %v1439_v47 = vld [vmem:[#allocation2 + $0x288] sm:$0xff] }
0x110b   :  { %v1094_v49 = vpop.permute.xlu0 %1093  ;;  %v1088_v50 = vpop.permute.xlu1 %1087 }
0x110c   :  { %v1098_v51 = vsel %vm226_vm3, %v1088_v50, %v1094_v49 }
0x110d   :  { %v1100_v53 = vmul.f32 %v1918_v10, %v1098_v51 }
0x110f   :  { %v1101_v54 = vpack.c.bf16 %v1100_v53, %v1099_v52  ;;  %v1222_v53 = vld [vmem:[#allocation2 + $0x190] sm:$0xff] }
0x1111   :  { %1506 = vmatmul.msk.bf16.vlgmr.msrb.gmra.mxu3 %vm317_vm2, %v1101_v54 }
0x1194   :  { %v1114_v13 = vpop.f32.mrf.mxu3 }
0x1195   :  { %v1119_v43 = vadd.f32 %v1114_v13, %v296_v59  ;;  %v1226_v59 = vld [vmem:[#allocation2 + $0x1b0] sm:$0xff]  ;;  %v1225_v13 = vld [vmem:[#allocation2 + $0x1a8] sm:$0xff] }
0x1197   :  { %1637 = vtanh.f32 %v1119_v43  ;;  %v1507_v1 = vmul.f32 -1.442695, %v1119_v43  ;;  %v1224_v43 = vld [vmem:[#allocation2 + $0x1a0] sm:$0xff] }
0x119c   :  { %v1116_v31 = vpop.f32.mrf.mxu3 }
0x119d   :  { %v1638_v61 = vpop.eup %1637  ;;  %v1120_v63 = vadd.f32 %v1116_v31, %v298_v21  ;;  %v1281_v31 = vlaneseq }
0x119e   :  { %1165 = vrot.lane.b32.xlu1 %v1638_v61, %s1688_s1 }
0x119f   :  { %1639 = vtanh.f32 %v1120_v63  ;;  %v1508_v10 = vmul.f32 -1.442695, %v1120_v63  ;;  %v1282_v61 = vshrl.u32 %v1281_v31, 7 }
0x11a1   :  { %1641 = vpow2.f32 %v1508_v10  ;;  %vm1284_vm7 = vcmp.lt.s32.totalorder %v1282_v61, 4  ;;  %vm1296_vm8 = vcmp.ge.s32.totalorder %v1282_v61, 4 }
0x11a5   :  { %v1640_v23 = vpop.eup %1639 }
0x11a6   :  { %1167 = vrot.lane.b32.xlu2 %v1640_v23, %s1688_s1 }
0x11a7   :  { %v1642_v39 = vpop.eup %1641 }
0x11a8   :  { %v1128_v0 = vadd.f32 1.0, %v1642_v39 }
0x11aa   :  { %1643 = vrcp.f32 %v1128_v0  ;;  %v1155_v60 = vand.u32 2147483648, %v1128_v0  ;;  %vm1149_vm12 = vweird.f32 %v1128_v0  ;;  %v1153_v11 = vand.u32 2147483647, %v1128_v0 }
0x11ab   :  { %1645 = vpow2.f32 %v1507_v1 }
0x11ac   :  { %v1156_v14 = vor.u32 1.1754944e-38, %v1155_v60  ;;  %vm1154_vm14 = vcmp.eq.f32.partialorder %v1153_v11, 8.507059e+37 }
0x11b0   :  { %v1644_v2 = vpop.eup %1643 }
0x11b1   :  { %v1646_v35 = vpop.eup %1645  ;;  %v1145_v3 = vmul.f32 %v1644_v2, %v1128_v0  ;;  %vm1150_vm2 = vweird.f32 %v1644_v2 }
0x11b2   :  { %v1127_v5 = vadd.f32 1.0, %v1646_v35  ;;  %vm1151_vm13 = vmor %vm1149_vm12, %vm1150_vm2 }
0x11b3   :  { %v1146_v6 = vsub.f32 1.0, %v1145_v3 }
0x11b4   :  { %1647 = vrcp.f32 %v1127_v5  ;;  %v1140_v4 = vand.u32 2147483648, %v1127_v5  ;;  %vm1134_vm4 = vweird.f32 %v1127_v5  ;;  %v1138_v28 = vand.u32 2147483647, %v1127_v5 }
0x11b5   :  { %v1147_v7 = vmul.f32 %v1644_v2, %v1146_v6 }
0x11b6   :  { %v1141_v58 = vor.u32 1.1754944e-38, %v1140_v4  ;;  %vm1139_vm6 = vcmp.eq.f32.partialorder %v1138_v28, 8.507059e+37 }
0x11b7   :  { %v1148_v22 = vadd.f32 %v1644_v2, %v1147_v7 }
0x11b9   :  { %v1152_v12 = vsel %vm1151_vm13, %v1644_v2, %v1148_v22 }
0x11ba   :  { %v1648_v9 = vpop.eup %1647  ;;  %v1157_v20 = vsel %vm1154_vm14, %v1156_v14, %v1152_v12 }
0x11bb   :  { %v1130_v55 = vmul.f32 %v1648_v9, %v1127_v5  ;;  %vm1135_vm15 = vweird.f32 %v1648_v9  ;;  %v1162_v36 = vmul.f32 %v1157_v20, %v1970_v30  ;;  %v1200_v30 = vpack.c.bf16 %v1197_v48, %v1196_v46  ;;  %v1440_v48 = vld [vmem:[#allocation2 + $0x290] sm:$0xff] }
0x11bc   :  { %vm1136_vm5 = vmor %vm1134_vm4, %vm1135_vm15 }
0x11bd   :  { %v1131_v26 = vsub.f32 1.0, %v1130_v55  ;;  %1215 = vmatpush.bf16.msra.mxu2 %v1200_v30  ;;  %v1437_v30 = vld [vmem:[#allocation2 + $0x278] sm:$0xff] }
0x11bf   :  { %v1132_v27 = vmul.f32 %v1648_v9, %v1131_v26  ;;  %v1223_v26 = vld [vmem:[#allocation2 + $0x198] sm:$0xff] }
0x11c1   :  { %v1133_v62 = vadd.f32 %v1648_v9, %v1132_v27 }
0x11c3   :  { %v1137_v29 = vsel %vm1136_vm5, %v1648_v9, %v1133_v62 }
0x11c4   :  { %v1142_v33 = vsel %vm1139_vm6, %v1141_v58, %v1137_v29  ;;  %v1228_v29 = vld [vmem:[#allocation2 + $0x1c0] sm:$0xf] }
0x11c5   :  { %v1161_v17 = vmul.f32 %v1142_v33, %v1958_v16 }
0x1200   :  { %v1168_v19 = vpop.permute.xlu2 %1167 }
0x1201   :  { %v1172_v24 = vmul.f32 %v1168_v19, %v1157_v20 }
0x1203   :  { %1177 = vrot.lane.b32.xlu1 %v1172_v24, %s1689_s20 }
0x1210   :  { %v1166_v32 = vpop.permute.xlu1 %1165 }
0x1211   :  { %v1171_v34 = vmul.f32 %v1166_v32, %v1142_v33 }
0x1213   :  { %1175 = vrot.lane.b32.xlu0 %v1171_v34, %s1689_s20  ;;  %v1412_v34 = vld [vmem:[#allocation2 + $0x270] sm:$0xff] }
0x1275   :  { %v1178_v37 = vpop.permute.xlu1 %1177 }
0x1276   :  { %v1182_v8 = vadd.f32 %v1178_v37, %v1162_v36 }
0x1278   :  { %1649 = vtanh.f32 %v1182_v8 }
0x127e   :  { %v1650_v38 = vpop.eup %1649 }
0x127f   :  { %1189 = vrot.lane.b32.xlu0 %v1650_v38, %s1688_s1 }
0x1285   :  { %v1176_v40 = vpop.permute.xlu0 %1175 }
0x1286   :  { %v1181_v41 = vadd.f32 %v1176_v40, %v1161_v17  ;;  %v1409_v17 = vld [vmem:[#allocation2 + $0x258] sm:$0xff]  ;;  %v1410_v40 = vld [vmem:[#allocation2 + $0x260] sm:$0xff] }
0x1288   :  { %1651 = vtanh.f32 %v1181_v41  ;;  %v1413_v41 = vpack.c.bf16 %v1410_v40, %v1409_v17 }
0x128e   :  { %v1652_v42 = vpop.eup %1651 }
0x128f   :  { %1187 = vrot.lane.b32.xlu2 %v1652_v42, %s1688_s1 }
0x12e9   :  { %v1188_v25 = vpop.permute.xlu2 %1187 }
0x12ea   :  { %v1992_v50 = vmul.f32 %v1188_v25, %v1142_v33  ;;  %v1411_v33 = vld [vmem:[#allocation2 + $0x268] sm:$0xff]  ;;  %v1442_v25 = vpack.c.bf16 %v1440_v48, %v1439_v47 }
0x12eb   :  { %v1414_v36 = vpack.c.bf16 %v1412_v34, %v1411_v33 }
0x12f1   :  { %v1190_v49 = vpop.permute.xlu0 %1189 }
0x12f2   :  { %v1194_v51 = vmul.f32 %v1190_v49, %v1157_v20  ;;  %v1438_v49 = vld [vmem:[#allocation2 + $0x280] sm:$0xff] }
0x12f4   :  { %v1195_v16 = vpack.c.bf16 %v1194_v51, %v1992_v50  ;;  %v1441_v51 = vpack.c.bf16 %v1438_v49, %v1437_v30 }
0x12f6   :  { %1203 = vrot.lane.b32.xlu1 %v1195_v16, %s1689_s20 }
0x1368   :  { %v1204_v52 = vpop.permute.xlu1 %1203 }
0x1369   :  { %1509 = vmatmul.msk.bf16.vlgmr.msra.gmra.mxu2 %vm226_vm3, %v1204_v52 }
0x13ec   :  { %v1217_v54 = vpop.f32.mrf.mxu2 }
0x13ed   :  { %1247 = vmatpush.msra.mxu3 %v1217_v54 }
0x13ee   :  { %1510 = vmatmul.msk.f32.vlgmr.msra.gmra.mxu3 %vm102_vm1, %v1222_v53 }
0x13ef   :  { %1272 = vmatpush.msrb.mxu3 %v1227_v57 }
0x13f1   :  { %1273 = vmatpush.msrb.mxu3 %v1226_v59 }
0x13f3   :  { %1274 = vmatpush.msrb.mxu3 %v1225_v13 }
0x13f4   :  { %v1219_v56 = vpop.f32.mrf.mxu2 }
0x13f5   :  { %1384 = vrot.lane.b32.xlu0 %v1219_v56, %s1688_s1  ;;  %1253 = vrot.lane.b32.xlu2 %v1219_v56, %s1690_s0  ;;  %v1443_v56 = vld [vmem:[#allocation2 + $0x1c8] sm:$0xff] }
0x13f6   :  { %1275 = vmatpush.msrb.mxu3 %v1224_v43 }
0x144f   :  { %v1254_v15 = vpop.permute.xlu2 %1253 }
0x1467   :  { %v1385_v37 = vpop.permute.xlu0 %1384 }
0x1471   :  { %v1249_v18 = vpop.f32.mrf.mxu3 }
0x1472   :  { %v1256_v21 = vmul.f32 %v1254_v15, %v1249_v18 }
0x1474   :  { %1511 = vmatmul.msk.f32.vlgmr.msrb.gmra.mxu3 %vm226_vm3, %v1256_v21 }
0x14f7   :  { %v1277_v63 = vpop.f32.mrf.mxu3 }
0x14f8   :  { %v1280_v23 = vmul.f32 0.35355338, %v1277_v63 }
0x14fa   :  { %v1286_v10 = vsel %vm1284_vm7, %v1280_v23, -1e+30  ;;  %v1299_v39 = vsel %vm1296_vm8, %v1280_v23, -1e+30 }
0x14fb   :  { %v1288_v0 = vsel %vm1287_vm9, %v1286_v10, -inf  ;;  %v1300_v1 = vsel %vm1287_vm9, %v1299_v39, -inf }
0x14fc   :  { %v1289_v2 = vrot.slane %v1288_v0, 4  ;;  %v1301_v35 = vrot.slane %v1300_v1, 4 }
0x14fe   :  { %v1290_v3 = vmax.f32 %v1288_v0, %v1289_v2  ;;  %v1302_v5 = vmax.f32 %v1300_v1, %v1301_v35 }
0x1500   :  { %v1291_v6 = vrot.slane %v1290_v3, 2  ;;  %v1303_v7 = vrot.slane %v1302_v5, 2 }
0x1502   :  { %v1292_v22 = vmax.f32 %v1290_v3, %v1291_v6  ;;  %v1304_v9 = vmax.f32 %v1302_v5, %v1303_v7 }
0x1504   :  { %v1293_v60 = vrot.slane %v1292_v22, 1  ;;  %v1305_v11 = vrot.slane %v1304_v9, 1 }
0x1506   :  { %v1294_v12 = vmax.f32 %v1292_v22, %v1293_v60  ;;  %v1306_v55 = vmax.f32 %v1304_v9, %v1305_v11 }
0x1508   :  { %v1295_v14 = vsel %vm1284_vm7, %v1294_v12, 0.0 }
0x1509   :  { %v1307_v19 = vsel %vm1296_vm8, %v1306_v55, %v1295_v14 }
0x150a   :  { %v1308_v20 = vsub.f32 %v1280_v23, %v1307_v19 }
0x150c   :  { %v1309_v24 = vmul.f32 1.442695, %v1308_v20 }
0x150e   :  { %1653 = vpow2.f32 %v1309_v24 }
0x1514   :  { %v1654_v27 = vpop.eup %1653 }
0x1515   :  { %1329 = vmatpush.msrb.mxu2 %v1654_v27 }
0x1516   :  { %1512 = vmatmul.msk.f32.vlgmr.msrb.gmra.mxu2 %vm102_vm1, %v1223_v26 }
0x1517   :  { %1514 = vmatpush.msk.msra.mxu2 %vm127_vm0, %v1228_v29 }
0x1519   :  { %1424 = vmatpush.bf16.msrb.mxu2 %v1414_v36 }
0x151d   :  { %1425 = vmatpush.bf16.msrb.mxu2 %v1413_v41 }
0x1599   :  { %v1331_v62 = vpop.f32.mrf.mxu2 }
0x159a   :  { %vm1334_vm10 = vcmp.gt.f32.partialorder %v1331_v62, 0.0 }
0x159b   :  { %v1335_v4 = vsel %vm1334_vm10, %v1331_v62, 1.0 }
0x159c   :  { %1655 = vrcp.f32 %v1335_v4 }
0x15a2   :  { %v1656_v28 = vpop.eup %1655 }
0x15a3   :  { %1352 = vmatpush.msra.mxu3 %v1656_v28 }
0x15a4   :  { %1513 = vmatmul.msk.f32.vlgmr.msra.gmra.mxu3 %vm102_vm1, %v1222_v53 }
0x1627   :  { %v1354_v58 = vpop.f32.mrf.mxu3 }
0x1628   :  { %v1357_v32 = vmul.f32 %v1654_v27, %v1354_v58 }
0x162a   :  { %1515 = vmatmul.msk.f32.vlgmr.msra.gmra.mxu2 %vm1287_vm9, %v1357_v32 }
0x16ad   :  { %v1381_v8 = vpop.f32.mrf.mxu2 }
0x16ae   :  { %v1387_v38 = vmul.f32 %v1385_v37, %v1381_v8 }
0x16b0   :  { %1403 = vmatpush.msrb.mxu3 %v1387_v38 }
0x16b1   :  { %1516 = vmatmul.msk.f32.vlgmr.msrb.gmra.mxu3 %vm102_vm1, %v1223_v26 }
0x16b2   :  { %1456 = vmatpush.bf16.msra.mxu3 %v1442_v25 }
0x16b6   :  { %1457 = vmatpush.bf16.msra.mxu3 %v1441_v51 }
0x1734   :  { %v1405_v42 = vpop.f32.mrf.mxu3 }
0x1735   :  { %v1408_v44 = vpack.c.bf16 %v1405_v42, %v1405_v42 }
0x1737   :  { %1517 = vmatmul.msk.bf16.vlgmr.msrb.gmra.mxu2 %vm226_vm3, %v1408_v44 }
0x17ba   :  { %v1427_v45 = vpop.f32.mrf.mxu2 }
0x17bb   :  { %1432 = vrot.lane.b32.xlu1 %v1427_v45, %s1690_s0 }
0x17c2   :  { %v1429_v46 = vpop.f32.mrf.mxu2 }
0x182d   :  { %v1433_v16 = vpop.permute.xlu1 %1432 }
0x182e   :  { %v1435_v52 = vadd.f32 %v1433_v16, %v1992_v50 }
0x1830   :  { %v1436_v53 = vpack.c.bf16 %v1435_v52, %v1435_v52 }
0x1832   :  { %1445 = vrot.lane.b32.xlu2 %v1436_v53, %s1689_s20 }
0x188c   :  { %v1446_v54 = vpop.permute.xlu2 %1445 }
0x188d   :  { %1518 = vmatmul.msk.bf16.vlgmr.msra.gmra.mxu3 %vm226_vm3, %v1446_v54 }
0x1910   :  { %v1459_v57 = vpop.f32.mrf.mxu3 }
0x1911   :  { %v1460_v59 = vadd.f32 %v1459_v57, %v1443_v56 }
0x1913   :  { %1463 = vst [vmem:[%s2022_s2] sm:$0xff] %v1460_v59 }
0x1918   :  { %v1461_v13 = vpop.f32.mrf.mxu3 }
0x1919   :  { %1468 = vsyncpa [#allocation3], 1 }

</bundles_post_ra>
